<compile_context>
chip_gen: v5e
topology: v5e:2x2
jax: 0.10.0
libtpu: 0.0.40
codegen_flags: <defaults>
</compile_context>

<pallas_src>
import functools

import numpy as np
import jax
import jax.numpy as jnp
from jax.experimental import pallas as pl
from jax.experimental.pallas import tpu as pltpu


# ----------------------------------------------------------------------------
# Static toy architecture (Python-level constants -> never traced)
# ----------------------------------------------------------------------------
NA, NC = 3, 2                       # anchors per cell, classes
HEAD_C = NA * (5 + NC)              # 21 head channels
IN_HW, IN_C = 16, 4                 # network input: 16x16x4 (NHWC)
OUT_HW = 2                          # head spatial size (16 -> 8 -> 4 -> 2)
HEAD_PAD = 128                      # head output lane-padded to one vreg width
H_C3 = 4                            # per-image spatial size at the C3 stage
SPPF_HW = OUT_HW                    # per-image spatial size at the SPPF stage
SPPF_C = 16                         # channels entering the SPPF max pools
NEG = float("-inf")

# name: (kernel, cin, cout)
LAYERS = (
    ("stem",      3, IN_C, 8),
    ("down1",     3, 8,   16),
    ("c3_cv1",    1, 16,   8),
    ("c3_cv2",    1, 16,   8),
    ("c3_b_cv1",  1, 8,    8),
    ("c3_b_cv2",  3, 8,    8),
    ("c3_cv3",    1, 16,  16),
    ("down2",     3, 16,  32),
    ("sppf_cv1",  1, 32,  16),
    ("sppf_cv2",  1, 64,  32),
    ("head",      1, 32, HEAD_C),
)


# ----------------------------------------------------------------------------
# Parameter init (synthetic weights)
# ----------------------------------------------------------------------------
def _init_conv(key, k, cin, cout):
    k1, k2 = jax.random.split(key)
    scale = 1.0 / float(k * k * cin) ** 0.5
    w = jax.random.normal(k1, (k * k * cin, cout), jnp.float32) * scale
    b = jax.random.normal(k2, (cout,), jnp.float32) * 0.01
    return {"w": w, "b": b}


def init_params(key):
    keys = jax.random.split(key, len(LAYERS))
    return {name: _init_conv(kk, k, cin, cout)
            for kk, (name, k, cin, cout) in zip(keys, LAYERS)}


# ----------------------------------------------------------------------------
# Host-side weight lowering: fold conv geometry (taps, stride, SAME padding)
# into small matrices so the kernel only does 2-D matmuls on (G*H, W*C) slabs.
# ----------------------------------------------------------------------------
def _lower_1x1_concat(w_chunks, b, w_sp):
    """1x1 conv consuming a lane-concat of several activations.

    w_chunks[i]: (cin_i, cout) weight slice for input chunk i; the kernel feeds
    jnp.concatenate([chunk_0, chunk_1, ...], axis=1) where each chunk has a
    (w, channel) lane layout.  Returns M (sum_i w_sp*cin_i, w_sp*cout) and a
    (1, w_sp*cout) bias row.
    """
    blocks = [np.kron(np.eye(w_sp, dtype=np.float32), np.asarray(wc, np.float32))
              for wc in w_chunks]
    M = np.concatenate(blocks, axis=0)
    brow = np.tile(np.asarray(b, np.float32), w_sp)[None, :]
    return M, brow


def _lower_1x1(w, b, w_sp):
    return _lower_1x1_concat([w], b, w_sp)


def _lower_3x3(w, b, hin, win, stride):
    """w: (9*cin, cout), rows ordered (dy, dx, cin).

    Returns R (3, ho, hin) row-selection matrices (also do the stride-s
    subsample), M (3*win*cin, wo*cout) block weight, and a (1, wo*cout) bias
    row.  Out-of-range taps are dropped == zero padding.
    """
    cin = w.shape[0] // 9
    cout = w.shape[1]
    w3 = np.asarray(w, np.float32).reshape(3, 3, cin, cout)
    ho = (hin + 2 - 3) // stride + 1
    wo = (win + 2 - 3) // stride + 1

    R = np.zeros((3, ho, hin), np.float32)
    M = np.zeros((3, win * cin, wo * cout), np.float32)
    for dy in range(3):
        for i in range(ho):
            r = stride * i + dy - 1
            if 0 <= r < hin:
                R[dy, i, r] = 1.0
        for dx in range(3):
            for j in range(wo):
                c = stride * j + dx - 1
                if 0 <= c < win:
                    M[dy, c * cin:(c + 1) * cin,
                          j * cout:(j + 1) * cout] += w3[dy, dx]
    brow = np.tile(np.asarray(b, np.float32), wo)[None, :]
    return R, M.reshape(3 * win * cin, wo * cout), brow


def _pack_rows(entries, dtype, lanes=128, align=16):
    """Pack 2-D matrices into one (rows, 128) slab; row offsets 16-aligned."""
    offs, row = {}, 0
    for name, mat in entries:
        r, c = mat.shape
        offs[name] = (row, r, c)
        row += -(-r // align) * align
    slab = np.zeros((max(row, align), lanes), np.float32)
    for name, mat in entries:
        off, r, c = offs[name]
        slab[off:off + r, :c] = mat
    return jnp.asarray(slab, dtype), offs


def _pack_bias(entries, lanes=128):
    offs = {}
    slab = np.zeros((max(len(entries), 1), lanes), np.float32)
    for i, (name, vec) in enumerate(entries):
        offs[name] = (i, vec.shape[0])
        slab[i, :vec.shape[0]] = vec
    return jnp.asarray(slab, jnp.float32), offs


def lower_params(params, g):
    """Lower all conv weights and pack them into one bf16 slab + one f32 bias
    slab.  `g` = images folded along the sublane axis per grid step."""
    p = params
    wentries, bentries = [], []

    def add_w(name, mat):
        wentries.append((name, np.asarray(mat, np.float32)))

    def add_b(name, row):
        bentries.append((name, np.asarray(row, np.float32).reshape(-1)))

    def fold_R(R2d):   # (ho, hin) -> (g*ho, g*hin): batch fold along sublanes
        return np.kron(np.eye(g, dtype=np.float32), R2d)

    # stem / down1 / down2: 3x3 stride-2 (keep R: it also does the subsample)
    for name, hin in (("stem", 16), ("down1", 8), ("down2", 4)):
        R, M, b = _lower_3x3(p[name]["w"], p[name]["b"], hin, hin, 2)
        for d in range(3):
            add_w("%s_R%d" % (name, d), fold_R(R[d]))
        add_w(name + "_M", M)
        add_b(name, b)

    # C3 1x1 convs
    for name in ("c3_cv1", "c3_cv2", "c3_b_cv1"):
        M, b = _lower_1x1(p[name]["w"], p[name]["b"], 4)
        add_w(name + "_M", M)
        add_b(name, b)

    # c3_b_cv2: 3x3 stride-1 -> only M; row taps done with sublane shifts
    _, M, b = _lower_3x3(p["c3_b_cv2"]["w"], p["c3_b_cv2"]["b"], 4, 4, 1)
    add_w("c3_b_cv2_M", M)
    add_b("c3_b_cv2", b)

    # c3_cv3: single matmul on the lane-concat [bottleneck | cv2-branch]
    w3 = p["c3_cv3"]["w"]
    M, b = _lower_1x1_concat([w3[:8], w3[8:]], p["c3_cv3"]["b"], 4)
    add_w("c3_cv3_M", M)
    add_b("c3_cv3", b)

    # SPPF
    M, b = _lower_1x1(p["sppf_cv1"]["w"], p["sppf_cv1"]["b"], 2)
    add_w("sppf_cv1_M", M)
    add_b("sppf_cv1", b)

    # sppf_cv2: single matmul on lane-concat [y | m1 | m2 | m3] (128 lanes)
    w2 = p["sppf_cv2"]["w"]
    M, b = _lower_1x1_concat([w2[i * 16:(i + 1) * 16] for i in range(4)],
                             p["sppf_cv2"]["b"], 2)
    add_w("sppf_cv2_M", M)
    add_b("sppf_cv2", b)

    # head: 1x1 conv, output lane-padded from 42 to 128 (unmasked store)
    M, b = _lower_1x1(p["head"]["w"], p["head"]["b"], 2)       # (64,42),(1,42)
    Mp = np.zeros((M.shape[0], HEAD_PAD), np.float32)
    Mp[:, :M.shape[1]] = M
    bp = np.zeros((HEAD_PAD,), np.float32)
    bp[:b.shape[1]] = b[0]
    add_w("head_M", Mp)
    add_b("head", bp)

    wslab, woffs = _pack_rows(wentries, jnp.bfloat16)
    bslab, boffs = _pack_bias(bentries)
    return wslab, bslab, {"woffs": woffs, "boffs": boffs, "g": g}


def _num_grid_groups(batch):
    """v7x exposes 2 TensorCores -> give each core one image via the grid.
    v5e/v6e have a single TC, so fold the whole batch into the sublane axis
    (one grid step, taller matmuls, no serial per-step overhead)."""
    try:
        kind = jax.devices()[0].device_kind.lower()
    except Exception:
        kind = ""
    if ("v7" in kind or "7x" in kind) and batch >= 2 and batch % 2 == 0:
        return 2
    return 1


# ----------------------------------------------------------------------------
# In-kernel helpers (all plain jnp -> lowers on every TPU generation)
# ----------------------------------------------------------------------------
def _silu(v):
    # SiLU in f32 (v5e has no bf16 VPU/EUP); exp goes to the EUP slot.
    return v * (1.0 / (1.0 + jnp.exp(-v)))


def _shift_rows(v, shift, h_img, fill):
    """Shift rows by `shift` (+1 = down) with `fill`.  Rows hold G stacked
    images of height h_img; an iota mask keeps images independent."""
    h, w = v.shape
    s = abs(shift)
    pad = jnp.full((s, w), fill, v.dtype)
    if shift > 0:
        out = jnp.concatenate([pad, v[:h - s]], axis=0)
    else:
        out = jnp.concatenate([v[s:], pad], axis=0)
    if h_img < h:   # batch folded along sublanes: mask cross-image rows
        r = jax.lax.broadcasted_iota(jnp.int32, (h, w), 0) % h_img
        valid = (r >= s) if shift > 0 else (r < h_img - s)
        out = jnp.where(valid, out, jnp.full((h, w), fill, v.dtype))
    return out


def _shift_cols(v, k, fill):
    """Shift lanes by k (+ = right) with `fill` (lanes span a single image)."""
    h, w = v.shape
    s = abs(k)
    pad = jnp.full((h, s), fill, v.dtype)
    if k > 0:
        return jnp.concatenate([pad, v[:, :w - s]], axis=1)
    return jnp.concatenate([v[:, s:], pad], axis=1)


def _maxpool5(v, h_img, w_img, c):
    """Separable 5x5 / stride-1 SAME max pool on a (G*h_img, w_img*c) slab."""
    m = v
    for s in (1, 2):                                    # row (sublane) direction
        if s < h_img:
            m = jnp.maximum(m, jnp.maximum(_shift_rows(v, s, h_img, NEG),
                                           _shift_rows(v, -s, h_img, NEG)))
    out = m
    for s in (1, 2):                                    # column (lane) direction
        if s < w_img:
            out = jnp.maximum(out, jnp.maximum(_shift_cols(m, s * c, NEG),
                                               _shift_cols(m, -s * c, NEG)))
    return out


# ----------------------------------------------------------------------------
# Fused Pallas kernel (one grid step = one group of G images)
# ----------------------------------------------------------------------------
def _yolov5_kernel(x_ref, w_ref, b_ref, o_ref, *, woffs, boffs):
    bf16 = jnp.bfloat16

    def W(name):                                   # static slice of weight slab
        off, r, c = woffs[name]
        return w_ref[off:off + r, :c]

    def B(name):                                   # static slice of bias slab
        row, c = boffs[name]
        return b_ref[row:row + 1, :c]

    def mm(a16, m16):                              # bf16 MXU matmul, f32 acc
        return jnp.dot(a16, m16, preferred_element_type=jnp.float32)

    def conv1(a16, name):                          # 1x1 conv (block-diag weight)
        return mm(a16, W(name + "_M")) + B(name)

    def conv3_s2(a16, name):
        # Row taps via exact 0/1 selection matmuls (they also do the stride-2
        # subsample), so the f32->bf16 round-trip of the taps is lossless.
        taps = jnp.concatenate(
            [mm(W("%s_R%d" % (name, d)), a16) for d in range(3)],
            axis=1).astype(bf16)
        return mm(taps, W(name + "_M")) + B(name)

    x = x_ref[0]                                                # (G*16, 64) bf16

    # ---- backbone stem + first downsample ---------------------------------
    x = _silu(conv3_s2(x, "stem")).astype(bf16)                 # (G*8, 64)
    x = _silu(conv3_s2(x, "down1")).astype(bf16)                # (G*4, 64)

    # ---- C3 block (one shortcut Bottleneck) --------------------------------
    y1 = _silu(conv1(x, "c3_cv1"))                              # (G*4, 32) f32
    y2_16 = _silu(conv1(x, "c3_cv2")).astype(bf16)              # (G*4, 32)
    b1 = _silu(conv1(y1.astype(bf16), "c3_b_cv1"))              # (G*4, 32) f32
    # 3x3 stride-1 conv: row taps are +-1 sublane shifts (no R matmul); zero
    # fill == SAME zero padding; mask keeps stacked images independent.
    taps = jnp.concatenate(
        [_shift_rows(b1, 1, H_C3, 0.0), b1, _shift_rows(b1, -1, H_C3, 0.0)],
        axis=1).astype(bf16)                                    # (G*4, 96)
    bt = _silu(mm(taps, W("c3_b_cv2_M")) + B("c3_b_cv2")) + y1  # residual, f32
    # cv3 consumed concat([bottleneck, cv2-branch]); merged into ONE matmul on
    # the lane-concat operand (host-permuted weight rows).
    x = _silu(mm(jnp.concatenate([bt.astype(bf16), y2_16], axis=1),
                 W("c3_cv3_M")) + B("c3_cv3")).astype(bf16)     # (G*4, 64)

    # ---- second downsample --------------------------------------------------
    x = _silu(conv3_s2(x, "down2")).astype(bf16)                # (G*2, 64)

    # ---- SPPF: cv1 -> three chained 5x5 max pools -> cv2 --------------------
    y = _silu(conv1(x, "sppf_cv1"))                             # (G*2, 32) f32
    m1 = _maxpool5(y, SPPF_HW, SPPF_HW, SPPF_C)
    m2 = _maxpool5(m1, SPPF_HW, SPPF_HW, SPPF_C)
    m3 = _maxpool5(m2, SPPF_HW, SPPF_HW, SPPF_C)
    # cv2 consumed concat([y, m1, m2, m3]); merged into ONE matmul whose
    # operand is a full 128-lane vreg.
    cat16 = jnp.concatenate([y, m1, m2, m3], axis=1).astype(bf16)   # (G*2, 128)
    x = _silu(mm(cat16, W("sppf_cv2_M")) + B("sppf_cv2")).astype(bf16)

    # ---- Detect head: 1x1 conv, raw logits, lane-padded to 128 --------------
    o_ref[0] = conv1(x, "head").astype(o_ref.dtype)             # (G*2, 128)


# ----------------------------------------------------------------------------
# Forward wrapper
# ----------------------------------------------------------------------------
def yolov5_forward(wslab, bslab, x_nchw, *, meta):
    """Inference branch of YOLOv5.forward: returns {'preds': raw head logits}."""
    g = meta["g"]
    n_groups = meta["n_groups"]
    n, cin, hin, win = x_nchw.shape
    assert n == g * n_groups and cin == IN_C and hin == IN_HW and win == IN_HW

    # NCHW (PyTorch) -> NHWC -> lane-dense (groups, G*H, W*C) bf16 slabs.
    # bf16 input halves activation DMA bytes; the first matmul is bf16 anyway.
    x = jnp.transpose(x_nchw, (0, 2, 3, 1)).astype(jnp.bfloat16)
    x2d = x.reshape(n_groups, g * hin, win * IN_C)

    rows_out = g * OUT_HW
    kernel = functools.partial(_yolov5_kernel,
                               woffs=meta["woffs"], boffs=meta["boffs"])

    preds2d = pl.pallas_call(
        kernel,
        out_shape=jax.ShapeDtypeStruct((n_groups, rows_out, HEAD_PAD),
                                       jnp.float32),
        grid=(n_groups,),
        in_specs=[
            pl.BlockSpec((1, g * hin, win * IN_C), lambda i: (i, 0, 0)),
            # Single coalesced weight slab + single bias slab (2 DMAs instead
            # of ~28); constant index_map -> fetched once across the grid.
            pl.BlockSpec(wslab.shape, lambda i: (0, 0)),
            pl.BlockSpec(bslab.shape, lambda i: (0, 0)),
        ],
        out_specs=pl.BlockSpec((1, rows_out, HEAD_PAD), lambda i: (i, 0, 0)),
        compiler_params=pltpu.CompilerParams(
            dimension_semantics=("parallel",),   # v7x: one image per TensorCore
        ),
    )(x2d, wslab, bslab)

    # Unpad head lanes (128 -> 42) and restore (B, na, H, W, 5+nc).
    preds = preds2d[:, :, :OUT_HW * HEAD_C]
    preds = preds.reshape(n, OUT_HW, OUT_HW, NA, 5 + NC)
    preds = jnp.transpose(preds, (0, 3, 1, 2, 4))
    return {"preds": preds}


# ----------------------------------------------------------------------------
if __name__ == "__main__":
    key = jax.random.PRNGKey(0)
    pkey, xkey = jax.random.split(key)

    params = init_params(pkey)

    batch = 2
    n_groups = _num_grid_groups(batch)          # 2 on v7x, 1 on v5e/v6e
    g = batch // n_groups                       # images folded per grid step

    wslab, bslab, meta = lower_params(params, g)   # one-time host lowering
    meta["n_groups"] = n_groups

    x = jax.random.normal(xkey, (batch, IN_C, IN_HW, IN_HW), jnp.float32)  # NCHW

    fwd = jax.jit(functools.partial(yolov5_forward, meta=meta))
    out = fwd(wslab, bslab, x)
    jax.block_until_ready(out["preds"])

    assert out["preds"].shape == (batch, NA, OUT_HW, OUT_HW, 5 + NC)
    assert out["preds"].dtype == jnp.float32
    assert bool(jnp.all(jnp.isfinite(out["preds"])))
    print("KERNEL_OK")
</pallas_src>

<mosaic_0001>
module attributes {stable_mosaic.version = 11 : i64} {
  func.func @_yolov5_kernel(%arg0: i32, %arg1: memref<1x32x64xbf16, #tpu.memory_space<vmem>>, %arg2: memref<1296x128xbf16, #tpu.memory_space<vmem>>, %arg3: memref<11x128xf32, #tpu.memory_space<vmem>>, %arg4: memref<1x4x128xf32, #tpu.memory_space<vmem>>) attributes {dimension_semantics = [#tpu.dimension_semantics<parallel>], iteration_bounds = array<i64: 1>, scalar_prefetch = 0 : i64, scratch_operands = 0 : i64, tpu.core_type = #tpu.core_type<tc>, window_params = [{transform_indices = @transform_0, window_bounds = array<i64: 1, 32, 64>}, {pipeline_mode = #tpu.pipeline_mode<synchronous>, transform_indices = @transform_1, window_bounds = array<i64: 1296, 128>}, {pipeline_mode = #tpu.pipeline_mode<synchronous>, transform_indices = @transform_2, window_bounds = array<i64: 11, 128>}, {transform_indices = @transform_3, window_bounds = array<i64: 1, 4, 128>}]} {
    %c0 = arith.constant 0 : index
    %c0_0 = arith.constant 0 : index
    %c0_1 = arith.constant 0 : index
    %0 = vector.load %arg1[%c0, %c0_0, %c0_1] : memref<1x32x64xbf16, #tpu.memory_space<vmem>>, vector<1x32x64xbf16>
    %1 = vector.shape_cast %0 : vector<1x32x64xbf16> to vector<32x64xbf16>
    %c0_2 = arith.constant 0 : index
    %c0_3 = arith.constant 0 : index
    %2 = vector.load %arg2[%c0_2, %c0_3] : memref<1296x128xbf16, #tpu.memory_space<vmem>>, vector<16x32xbf16>
    %cst = arith.constant dense<0.000000e+00> : vector<16x64xf32>
    %3 = tpu.matmul %2, %1, %cst {dimension_numbers = #tpu.dot_dimension_numbers<[1], [0], [0], [1], [0, 0, 1, 1], [], []>} : vector<16x32xbf16>, vector<32x64xbf16>, vector<16x64xf32> -> vector<16x64xf32>
    %c16 = arith.constant 16 : index
    %c0_4 = arith.constant 0 : index
    %4 = vector.load %arg2[%c16, %c0_4] : memref<1296x128xbf16, #tpu.memory_space<vmem>>, vector<16x32xbf16>
    %cst_5 = arith.constant dense<0.000000e+00> : vector<16x64xf32>
    %5 = tpu.matmul %4, %1, %cst_5 {dimension_numbers = #tpu.dot_dimension_numbers<[1], [0], [0], [1], [0, 0, 1, 1], [], []>} : vector<16x32xbf16>, vector<32x64xbf16>, vector<16x64xf32> -> vector<16x64xf32>
    %c32 = arith.constant 32 : index
    %c0_6 = arith.constant 0 : index
    %6 = vector.load %arg2[%c32, %c0_6] : memref<1296x128xbf16, #tpu.memory_space<vmem>>, vector<16x32xbf16>
    %cst_7 = arith.constant dense<0.000000e+00> : vector<16x64xf32>
    %7 = tpu.matmul %6, %1, %cst_7 {dimension_numbers = #tpu.dot_dimension_numbers<[1], [0], [0], [1], [0, 0, 1, 1], [], []>} : vector<16x32xbf16>, vector<32x64xbf16>, vector<16x64xf32> -> vector<16x64xf32>
    %8 = tpu.concatenate %3, %5, %7 in 1 : vector<16x64xf32>, vector<16x64xf32>, vector<16x64xf32> -> vector<16x192xf32>
    %9 = arith.truncf %8 : vector<16x192xf32> to vector<16x192xbf16>
    %c48 = arith.constant 48 : index
    %c0_8 = arith.constant 0 : index
    %10 = vector.load %arg2[%c48, %c0_8] : memref<1296x128xbf16, #tpu.memory_space<vmem>>, vector<192x64xbf16>
    %cst_9 = arith.constant dense<0.000000e+00> : vector<16x64xf32>
    %11 = tpu.matmul %9, %10, %cst_9 {dimension_numbers = #tpu.dot_dimension_numbers<[1], [0], [0], [1], [0, 0, 1, 1], [], []>} : vector<16x192xbf16>, vector<192x64xbf16>, vector<16x64xf32> -> vector<16x64xf32>
    %c0_10 = arith.constant 0 : index
    %c0_11 = arith.constant 0 : index
    %12 = vector.load %arg3[%c0_10, %c0_11] : memref<11x128xf32, #tpu.memory_space<vmem>>, vector<1x64xf32>
    %13 = vector.broadcast %12 : vector<1x64xf32> to vector<16x64xf32>
    %14 = arith.addf %11, %13 : vector<16x64xf32>
    %cst_12 = arith.constant 0.000000e+00 : f32
    %15 = vector.broadcast %cst_12 : f32 to vector<16x64xf32>
    %16 = arith.subf %15, %14 : vector<16x64xf32>
    %17 = math.exp %16 : vector<16x64xf32>
    %cst_13 = arith.constant 1.000000e+00 : f32
    %18 = vector.broadcast %cst_13 : f32 to vector<16x64xf32>
    %19 = arith.addf %18, %17 : vector<16x64xf32>
    %cst_14 = arith.constant 1.000000e+00 : f32
    %20 = vector.broadcast %cst_14 : f32 to vector<16x64xf32>
    %21 = arith.divf %20, %19 : vector<16x64xf32>
    %22 = arith.mulf %14, %21 : vector<16x64xf32>
    %23 = arith.truncf %22 : vector<16x64xf32> to vector<16x64xbf16>
    %c240 = arith.constant 240 : index
    %c0_15 = arith.constant 0 : index
    %24 = vector.load %arg2[%c240, %c0_15] : memref<1296x128xbf16, #tpu.memory_space<vmem>>, vector<8x16xbf16>
    %cst_16 = arith.constant dense<0.000000e+00> : vector<8x64xf32>
    %25 = tpu.matmul %24, %23, %cst_16 {dimension_numbers = #tpu.dot_dimension_numbers<[1], [0], [0], [1], [0, 0, 1, 1], [], []>} : vector<8x16xbf16>, vector<16x64xbf16>, vector<8x64xf32> -> vector<8x64xf32>
    %c256 = arith.constant 256 : index
    %c0_17 = arith.constant 0 : index
    %26 = vector.load %arg2[%c256, %c0_17] : memref<1296x128xbf16, #tpu.memory_space<vmem>>, vector<8x16xbf16>
    %cst_18 = arith.constant dense<0.000000e+00> : vector<8x64xf32>
    %27 = tpu.matmul %26, %23, %cst_18 {dimension_numbers = #tpu.dot_dimension_numbers<[1], [0], [0], [1], [0, 0, 1, 1], [], []>} : vector<8x16xbf16>, vector<16x64xbf16>, vector<8x64xf32> -> vector<8x64xf32>
    %c272 = arith.constant 272 : index
    %c0_19 = arith.constant 0 : index
    %28 = vector.load %arg2[%c272, %c0_19] : memref<1296x128xbf16, #tpu.memory_space<vmem>>, vector<8x16xbf16>
    %cst_20 = arith.constant dense<0.000000e+00> : vector<8x64xf32>
    %29 = tpu.matmul %28, %23, %cst_20 {dimension_numbers = #tpu.dot_dimension_numbers<[1], [0], [0], [1], [0, 0, 1, 1], [], []>} : vector<8x16xbf16>, vector<16x64xbf16>, vector<8x64xf32> -> vector<8x64xf32>
    %30 = tpu.concatenate %25, %27, %29 in 1 : vector<8x64xf32>, vector<8x64xf32>, vector<8x64xf32> -> vector<8x192xf32>
    %31 = arith.truncf %30 : vector<8x192xf32> to vector<8x192xbf16>
    %c288 = arith.constant 288 : index
    %c0_21 = arith.constant 0 : index
    %32 = vector.load %arg2[%c288, %c0_21] : memref<1296x128xbf16, #tpu.memory_space<vmem>>, vector<192x64xbf16>
    %cst_22 = arith.constant dense<0.000000e+00> : vector<8x64xf32>
    %33 = tpu.matmul %31, %32, %cst_22 {dimension_numbers = #tpu.dot_dimension_numbers<[1], [0], [0], [1], [0, 0, 1, 1], [], []>} : vector<8x192xbf16>, vector<192x64xbf16>, vector<8x64xf32> -> vector<8x64xf32>
    %c1 = arith.constant 1 : index
    %c0_23 = arith.constant 0 : index
    %34 = vector.load %arg3[%c1, %c0_23] : memref<11x128xf32, #tpu.memory_space<vmem>>, vector<1x64xf32>
    %35 = vector.broadcast %34 : vector<1x64xf32> to vector<8x64xf32>
    %36 = arith.addf %33, %35 : vector<8x64xf32>
    %cst_24 = arith.constant 0.000000e+00 : f32
    %37 = vector.broadcast %cst_24 : f32 to vector<8x64xf32>
    %38 = arith.subf %37, %36 : vector<8x64xf32>
    %39 = math.exp %38 : vector<8x64xf32>
    %cst_25 = arith.constant 1.000000e+00 : f32
    %40 = vector.broadcast %cst_25 : f32 to vector<8x64xf32>
    %41 = arith.addf %40, %39 : vector<8x64xf32>
    %cst_26 = arith.constant 1.000000e+00 : f32
    %42 = vector.broadcast %cst_26 : f32 to vector<8x64xf32>
    %43 = arith.divf %42, %41 : vector<8x64xf32>
    %44 = arith.mulf %36, %43 : vector<8x64xf32>
    %45 = arith.truncf %44 : vector<8x64xf32> to vector<8x64xbf16>
    %c720 = arith.constant 720 : index
    %c0_27 = arith.constant 0 : index
    %46 = vector.load %arg2[%c720, %c0_27] : memref<1296x128xbf16, #tpu.memory_space<vmem>>, vector<64x32xbf16>
    %cst_28 = arith.constant dense<0.000000e+00> : vector<8x32xf32>
    %47 = tpu.matmul %45, %46, %cst_28 {dimension_numbers = #tpu.dot_dimension_numbers<[1], [0], [0], [1], [0, 0, 1, 1], [], []>} : vector<8x64xbf16>, vector<64x32xbf16>, vector<8x32xf32> -> vector<8x32xf32>
    %c3 = arith.constant 3 : index
    %c0_29 = arith.constant 0 : index
    %48 = vector.load %arg3[%c3, %c0_29] : memref<11x128xf32, #tpu.memory_space<vmem>>, vector<1x32xf32>
    %49 = vector.broadcast %48 : vector<1x32xf32> to vector<8x32xf32>
    %50 = arith.addf %47, %49 : vector<8x32xf32>
    %cst_30 = arith.constant 0.000000e+00 : f32
    %51 = vector.broadcast %cst_30 : f32 to vector<8x32xf32>
    %52 = arith.subf %51, %50 : vector<8x32xf32>
    %53 = math.exp %52 : vector<8x32xf32>
    %cst_31 = arith.constant 1.000000e+00 : f32
    %54 = vector.broadcast %cst_31 : f32 to vector<8x32xf32>
    %55 = arith.addf %54, %53 : vector<8x32xf32>
    %cst_32 = arith.constant 1.000000e+00 : f32
    %56 = vector.broadcast %cst_32 : f32 to vector<8x32xf32>
    %57 = arith.divf %56, %55 : vector<8x32xf32>
    %58 = arith.mulf %50, %57 : vector<8x32xf32>
    %c784 = arith.constant 784 : index
    %c0_33 = arith.constant 0 : index
    %59 = vector.load %arg2[%c784, %c0_33] : memref<1296x128xbf16, #tpu.memory_space<vmem>>, vector<64x32xbf16>
    %cst_34 = arith.constant dense<0.000000e+00> : vector<8x32xf32>
    %60 = tpu.matmul %45, %59, %cst_34 {dimension_numbers = #tpu.dot_dimension_numbers<[1], [0], [0], [1], [0, 0, 1, 1], [], []>} : vector<8x64xbf16>, vector<64x32xbf16>, vector<8x32xf32> -> vector<8x32xf32>
    %c4 = arith.constant 4 : index
    %c0_35 = arith.constant 0 : index
    %61 = vector.load %arg3[%c4, %c0_35] : memref<11x128xf32, #tpu.memory_space<vmem>>, vector<1x32xf32>
    %62 = vector.broadcast %61 : vector<1x32xf32> to vector<8x32xf32>
    %63 = arith.addf %60, %62 : vector<8x32xf32>
    %cst_36 = arith.constant 0.000000e+00 : f32
    %64 = vector.broadcast %cst_36 : f32 to vector<8x32xf32>
    %65 = arith.subf %64, %63 : vector<8x32xf32>
    %66 = math.exp %65 : vector<8x32xf32>
    %cst_37 = arith.constant 1.000000e+00 : f32
    %67 = vector.broadcast %cst_37 : f32 to vector<8x32xf32>
    %68 = arith.addf %67, %66 : vector<8x32xf32>
    %cst_38 = arith.constant 1.000000e+00 : f32
    %69 = vector.broadcast %cst_38 : f32 to vector<8x32xf32>
    %70 = arith.divf %69, %68 : vector<8x32xf32>
    %71 = arith.mulf %63, %70 : vector<8x32xf32>
    %72 = arith.truncf %71 : vector<8x32xf32> to vector<8x32xbf16>
    %73 = arith.truncf %58 : vector<8x32xf32> to vector<8x32xbf16>
    %c848 = arith.constant 848 : index
    %c0_39 = arith.constant 0 : index
    %74 = vector.load %arg2[%c848, %c0_39] : memref<1296x128xbf16, #tpu.memory_space<vmem>>, vector<32x32xbf16>
    %cst_40 = arith.constant dense<0.000000e+00> : vector<8x32xf32>
    %75 = tpu.matmul %73, %74, %cst_40 {dimension_numbers = #tpu.dot_dimension_numbers<[1], [0], [0], [1], [0, 0, 1, 1], [], []>} : vector<8x32xbf16>, vector<32x32xbf16>, vector<8x32xf32> -> vector<8x32xf32>
    %c5 = arith.constant 5 : index
    %c0_41 = arith.constant 0 : index
    %76 = vector.load %arg3[%c5, %c0_41] : memref<11x128xf32, #tpu.memory_space<vmem>>, vector<1x32xf32>
    %77 = vector.broadcast %76 : vector<1x32xf32> to vector<8x32xf32>
    %78 = arith.addf %75, %77 : vector<8x32xf32>
    %cst_42 = arith.constant 0.000000e+00 : f32
    %79 = vector.broadcast %cst_42 : f32 to vector<8x32xf32>
    %80 = arith.subf %79, %78 : vector<8x32xf32>
    %81 = math.exp %80 : vector<8x32xf32>
    %cst_43 = arith.constant 1.000000e+00 : f32
    %82 = vector.broadcast %cst_43 : f32 to vector<8x32xf32>
    %83 = arith.addf %82, %81 : vector<8x32xf32>
    %cst_44 = arith.constant 1.000000e+00 : f32
    %84 = vector.broadcast %cst_44 : f32 to vector<8x32xf32>
    %85 = arith.divf %84, %83 : vector<8x32xf32>
    %86 = arith.mulf %78, %85 : vector<8x32xf32>
    %cst_45 = arith.constant 0.000000e+00 : f32
    %87 = vector.broadcast %cst_45 : f32 to vector<1x32xf32>
    %88 = vector.extract_strided_slice %86 {offsets = [0, 0], sizes = [7, 32], strides = [1, 1]} : vector<8x32xf32> to vector<7x32xf32>
    %89 = tpu.concatenate %87, %88 in 0 : vector<1x32xf32>, vector<7x32xf32> -> vector<8x32xf32>
    %90 = tpu.iota {dimensions = array<i32: 0>} : vector<8x32xi32>
    %c4_i32 = arith.constant 4 : i32
    %c0_i32 = arith.constant 0 : i32
    %91 = arith.cmpi eq, %c4_i32, %c0_i32 : i32
    %c1_i32 = arith.constant 1 : i32
    %92 = arith.select %91, %c1_i32, %c4_i32 : i32
    %93 = vector.broadcast %92 : i32 to vector<8x32xi32>
    %94 = arith.remsi %90, %93 : vector<8x32xi32>
    %c0_i32_46 = arith.constant 0 : i32
    %95 = vector.broadcast %c0_i32_46 : i32 to vector<8x32xi32>
    %96 = arith.cmpi ne, %94, %95 : vector<8x32xi32>
    %c0_i32_47 = arith.constant 0 : i32
    %97 = vector.broadcast %c0_i32_47 : i32 to vector<8x32xi32>
    %98 = arith.cmpi slt, %94, %97 : vector<8x32xi32>
    %c0_i32_48 = arith.constant 0 : i32
    %99 = arith.cmpi slt, %92, %c0_i32_48 : i32
    %100 = vector.broadcast %99 : i1 to vector<8x32xi1>
    %101 = vector.broadcast %100 : vector<8x32xi1> to vector<8x32xi1>
    %102 = arith.xori %98, %101 : vector<8x32xi1>
    %103 = arith.andi %102, %96 : vector<8x32xi1>
    %104 = vector.broadcast %92 : i32 to vector<8x32xi32>
    %105 = arith.addi %94, %104 : vector<8x32xi32>
    %106 = arith.select %103, %105, %94 : vector<8x32xi1>, vector<8x32xi32>
    %c1_i32_49 = arith.constant 1 : i32
    %107 = vector.broadcast %c1_i32_49 : i32 to vector<8x32xi32>
    %108 = arith.cmpi sge, %106, %107 : vector<8x32xi32>
    %cst_50 = arith.constant 0.000000e+00 : f32
    %109 = vector.broadcast %cst_50 : f32 to vector<8x32xf32>
    %110 = arith.select %108, %89, %109 : vector<8x32xi1>, vector<8x32xf32>
    %cst_51 = arith.constant 0.000000e+00 : f32
    %111 = vector.broadcast %cst_51 : f32 to vector<1x32xf32>
    %112 = vector.extract_strided_slice %86 {offsets = [1, 0], sizes = [7, 32], strides = [1, 1]} : vector<8x32xf32> to vector<7x32xf32>
    %113 = tpu.concatenate %112, %111 in 0 : vector<7x32xf32>, vector<1x32xf32> -> vector<8x32xf32>
    %114 = tpu.iota {dimensions = array<i32: 0>} : vector<8x32xi32>
    %c4_i32_52 = arith.constant 4 : i32
    %c0_i32_53 = arith.constant 0 : i32
    %115 = arith.cmpi eq, %c4_i32_52, %c0_i32_53 : i32
    %c1_i32_54 = arith.constant 1 : i32
    %116 = arith.select %115, %c1_i32_54, %c4_i32_52 : i32
    %117 = vector.broadcast %116 : i32 to vector<8x32xi32>
    %118 = arith.remsi %114, %117 : vector<8x32xi32>
    %c0_i32_55 = arith.constant 0 : i32
    %119 = vector.broadcast %c0_i32_55 : i32 to vector<8x32xi32>
    %120 = arith.cmpi ne, %118, %119 : vector<8x32xi32>
    %c0_i32_56 = arith.constant 0 : i32
    %121 = vector.broadcast %c0_i32_56 : i32 to vector<8x32xi32>
    %122 = arith.cmpi slt, %118, %121 : vector<8x32xi32>
    %c0_i32_57 = arith.constant 0 : i32
    %123 = arith.cmpi slt, %116, %c0_i32_57 : i32
    %124 = vector.broadcast %123 : i1 to vector<8x32xi1>
    %125 = vector.broadcast %124 : vector<8x32xi1> to vector<8x32xi1>
    %126 = arith.xori %122, %125 : vector<8x32xi1>
    %127 = arith.andi %126, %120 : vector<8x32xi1>
    %128 = vector.broadcast %116 : i32 to vector<8x32xi32>
    %129 = arith.addi %118, %128 : vector<8x32xi32>
    %130 = arith.select %127, %129, %118 : vector<8x32xi1>, vector<8x32xi32>
    %c3_i32 = arith.constant 3 : i32
    %131 = vector.broadcast %c3_i32 : i32 to vector<8x32xi32>
    %132 = arith.cmpi slt, %130, %131 : vector<8x32xi32>
    %cst_58 = arith.constant 0.000000e+00 : f32
    %133 = vector.broadcast %cst_58 : f32 to vector<8x32xf32>
    %134 = arith.select %132, %113, %133 : vector<8x32xi1>, vector<8x32xf32>
    %135 = tpu.concatenate %110, %86, %134 in 1 : vector<8x32xf32>, vector<8x32xf32>, vector<8x32xf32> -> vector<8x96xf32>
    %136 = arith.truncf %135 : vector<8x96xf32> to vector<8x96xbf16>
    %c880 = arith.constant 880 : index
    %c0_59 = arith.constant 0 : index
    %137 = vector.load %arg2[%c880, %c0_59] : memref<1296x128xbf16, #tpu.memory_space<vmem>>, vector<96x32xbf16>
    %cst_60 = arith.constant dense<0.000000e+00> : vector<8x32xf32>
    %138 = tpu.matmul %136, %137, %cst_60 {dimension_numbers = #tpu.dot_dimension_numbers<[1], [0], [0], [1], [0, 0, 1, 1], [], []>} : vector<8x96xbf16>, vector<96x32xbf16>, vector<8x32xf32> -> vector<8x32xf32>
    %c6 = arith.constant 6 : index
    %c0_61 = arith.constant 0 : index
    %139 = vector.load %arg3[%c6, %c0_61] : memref<11x128xf32, #tpu.memory_space<vmem>>, vector<1x32xf32>
    %140 = vector.broadcast %139 : vector<1x32xf32> to vector<8x32xf32>
    %141 = arith.addf %138, %140 : vector<8x32xf32>
    %cst_62 = arith.constant 0.000000e+00 : f32
    %142 = vector.broadcast %cst_62 : f32 to vector<8x32xf32>
    %143 = arith.subf %142, %141 : vector<8x32xf32>
    %144 = math.exp %143 : vector<8x32xf32>
    %cst_63 = arith.constant 1.000000e+00 : f32
    %145 = vector.broadcast %cst_63 : f32 to vector<8x32xf32>
    %146 = arith.addf %145, %144 : vector<8x32xf32>
    %cst_64 = arith.constant 1.000000e+00 : f32
    %147 = vector.broadcast %cst_64 : f32 to vector<8x32xf32>
    %148 = arith.divf %147, %146 : vector<8x32xf32>
    %149 = arith.mulf %141, %148 : vector<8x32xf32>
    %150 = arith.addf %149, %58 : vector<8x32xf32>
    %151 = arith.truncf %150 : vector<8x32xf32> to vector<8x32xbf16>
    %152 = tpu.concatenate %151, %72 in 1 : vector<8x32xbf16>, vector<8x32xbf16> -> vector<8x64xbf16>
    %c976 = arith.constant 976 : index
    %c0_65 = arith.constant 0 : index
    %153 = vector.load %arg2[%c976, %c0_65] : memref<1296x128xbf16, #tpu.memory_space<vmem>>, vector<64x64xbf16>
    %cst_66 = arith.constant dense<0.000000e+00> : vector<8x64xf32>
    %154 = tpu.matmul %152, %153, %cst_66 {dimension_numbers = #tpu.dot_dimension_numbers<[1], [0], [0], [1], [0, 0, 1, 1], [], []>} : vector<8x64xbf16>, vector<64x64xbf16>, vector<8x64xf32> -> vector<8x64xf32>
    %c7 = arith.constant 7 : index
    %c0_67 = arith.constant 0 : index
    %155 = vector.load %arg3[%c7, %c0_67] : memref<11x128xf32, #tpu.memory_space<vmem>>, vector<1x64xf32>
    %156 = vector.broadcast %155 : vector<1x64xf32> to vector<8x64xf32>
    %157 = arith.addf %154, %156 : vector<8x64xf32>
    %cst_68 = arith.constant 0.000000e+00 : f32
    %158 = vector.broadcast %cst_68 : f32 to vector<8x64xf32>
    %159 = arith.subf %158, %157 : vector<8x64xf32>
    %160 = math.exp %159 : vector<8x64xf32>
    %cst_69 = arith.constant 1.000000e+00 : f32
    %161 = vector.broadcast %cst_69 : f32 to vector<8x64xf32>
    %162 = arith.addf %161, %160 : vector<8x64xf32>
    %cst_70 = arith.constant 1.000000e+00 : f32
    %163 = vector.broadcast %cst_70 : f32 to vector<8x64xf32>
    %164 = arith.divf %163, %162 : vector<8x64xf32>
    %165 = arith.mulf %157, %164 : vector<8x64xf32>
    %166 = arith.truncf %165 : vector<8x64xf32> to vector<8x64xbf16>
    %c480 = arith.constant 480 : index
    %c0_71 = arith.constant 0 : index
    %167 = vector.load %arg2[%c480, %c0_71] : memref<1296x128xbf16, #tpu.memory_space<vmem>>, vector<4x8xbf16>
    %cst_72 = arith.constant dense<0.000000e+00> : vector<4x64xf32>
    %168 = tpu.matmul %167, %166, %cst_72 {dimension_numbers = #tpu.dot_dimension_numbers<[1], [0], [0], [1], [0, 0, 1, 1], [], []>} : vector<4x8xbf16>, vector<8x64xbf16>, vector<4x64xf32> -> vector<4x64xf32>
    %c496 = arith.constant 496 : index
    %c0_73 = arith.constant 0 : index
    %169 = vector.load %arg2[%c496, %c0_73] : memref<1296x128xbf16, #tpu.memory_space<vmem>>, vector<4x8xbf16>
    %cst_74 = arith.constant dense<0.000000e+00> : vector<4x64xf32>
    %170 = tpu.matmul %169, %166, %cst_74 {dimension_numbers = #tpu.dot_dimension_numbers<[1], [0], [0], [1], [0, 0, 1, 1], [], []>} : vector<4x8xbf16>, vector<8x64xbf16>, vector<4x64xf32> -> vector<4x64xf32>
    %c512 = arith.constant 512 : index
    %c0_75 = arith.constant 0 : index
    %171 = vector.load %arg2[%c512, %c0_75] : memref<1296x128xbf16, #tpu.memory_space<vmem>>, vector<4x8xbf16>
    %cst_76 = arith.constant dense<0.000000e+00> : vector<4x64xf32>
    %172 = tpu.matmul %171, %166, %cst_76 {dimension_numbers = #tpu.dot_dimension_numbers<[1], [0], [0], [1], [0, 0, 1, 1], [], []>} : vector<4x8xbf16>, vector<8x64xbf16>, vector<4x64xf32> -> vector<4x64xf32>
    %173 = tpu.concatenate %168, %170, %172 in 1 : vector<4x64xf32>, vector<4x64xf32>, vector<4x64xf32> -> vector<4x192xf32>
    %174 = arith.truncf %173 : vector<4x192xf32> to vector<4x192xbf16>
    %c528 = arith.constant 528 : index
    %c0_77 = arith.constant 0 : index
    %175 = vector.load %arg2[%c528, %c0_77] : memref<1296x128xbf16, #tpu.memory_space<vmem>>, vector<192x64xbf16>
    %cst_78 = arith.constant dense<0.000000e+00> : vector<4x64xf32>
    %176 = tpu.matmul %174, %175, %cst_78 {dimension_numbers = #tpu.dot_dimension_numbers<[1], [0], [0], [1], [0, 0, 1, 1], [], []>} : vector<4x192xbf16>, vector<192x64xbf16>, vector<4x64xf32> -> vector<4x64xf32>
    %c2 = arith.constant 2 : index
    %c0_79 = arith.constant 0 : index
    %177 = vector.load %arg3[%c2, %c0_79] : memref<11x128xf32, #tpu.memory_space<vmem>>, vector<1x64xf32>
    %178 = vector.broadcast %177 : vector<1x64xf32> to vector<4x64xf32>
    %179 = arith.addf %176, %178 : vector<4x64xf32>
    %cst_80 = arith.constant 0.000000e+00 : f32
    %180 = vector.broadcast %cst_80 : f32 to vector<4x64xf32>
    %181 = arith.subf %180, %179 : vector<4x64xf32>
    %182 = math.exp %181 : vector<4x64xf32>
    %cst_81 = arith.constant 1.000000e+00 : f32
    %183 = vector.broadcast %cst_81 : f32 to vector<4x64xf32>
    %184 = arith.addf %183, %182 : vector<4x64xf32>
    %cst_82 = arith.constant 1.000000e+00 : f32
    %185 = vector.broadcast %cst_82 : f32 to vector<4x64xf32>
    %186 = arith.divf %185, %184 : vector<4x64xf32>
    %187 = arith.mulf %179, %186 : vector<4x64xf32>
    %188 = arith.truncf %187 : vector<4x64xf32> to vector<4x64xbf16>
    %c1040 = arith.constant 1040 : index
    %c0_83 = arith.constant 0 : index
    %189 = vector.load %arg2[%c1040, %c0_83] : memref<1296x128xbf16, #tpu.memory_space<vmem>>, vector<64x32xbf16>
    %cst_84 = arith.constant dense<0.000000e+00> : vector<4x32xf32>
    %190 = tpu.matmul %188, %189, %cst_84 {dimension_numbers = #tpu.dot_dimension_numbers<[1], [0], [0], [1], [0, 0, 1, 1], [], []>} : vector<4x64xbf16>, vector<64x32xbf16>, vector<4x32xf32> -> vector<4x32xf32>
    %c8 = arith.constant 8 : index
    %c0_85 = arith.constant 0 : index
    %191 = vector.load %arg3[%c8, %c0_85] : memref<11x128xf32, #tpu.memory_space<vmem>>, vector<1x32xf32>
    %192 = vector.broadcast %191 : vector<1x32xf32> to vector<4x32xf32>
    %193 = arith.addf %190, %192 : vector<4x32xf32>
    %cst_86 = arith.constant 0.000000e+00 : f32
    %194 = vector.broadcast %cst_86 : f32 to vector<4x32xf32>
    %195 = arith.subf %194, %193 : vector<4x32xf32>
    %196 = math.exp %195 : vector<4x32xf32>
    %cst_87 = arith.constant 1.000000e+00 : f32
    %197 = vector.broadcast %cst_87 : f32 to vector<4x32xf32>
    %198 = arith.addf %197, %196 : vector<4x32xf32>
    %cst_88 = arith.constant 1.000000e+00 : f32
    %199 = vector.broadcast %cst_88 : f32 to vector<4x32xf32>
    %200 = arith.divf %199, %198 : vector<4x32xf32>
    %201 = arith.mulf %193, %200 : vector<4x32xf32>
    %cst_89 = arith.constant 0xFF800000 : f32
    %202 = vector.broadcast %cst_89 : f32 to vector<1x32xf32>
    %203 = vector.extract_strided_slice %201 {offsets = [0, 0], sizes = [3, 32], strides = [1, 1]} : vector<4x32xf32> to vector<3x32xf32>
    %204 = tpu.concatenate %202, %203 in 0 : vector<1x32xf32>, vector<3x32xf32> -> vector<4x32xf32>
    %205 = tpu.iota {dimensions = array<i32: 0>} : vector<4x32xi32>
    %c2_i32 = arith.constant 2 : i32
    %c0_i32_90 = arith.constant 0 : i32
    %206 = arith.cmpi eq, %c2_i32, %c0_i32_90 : i32
    %c1_i32_91 = arith.constant 1 : i32
    %207 = arith.select %206, %c1_i32_91, %c2_i32 : i32
    %208 = vector.broadcast %207 : i32 to vector<4x32xi32>
    %209 = arith.remsi %205, %208 : vector<4x32xi32>
    %c0_i32_92 = arith.constant 0 : i32
    %210 = vector.broadcast %c0_i32_92 : i32 to vector<4x32xi32>
    %211 = arith.cmpi ne, %209, %210 : vector<4x32xi32>
    %c0_i32_93 = arith.constant 0 : i32
    %212 = vector.broadcast %c0_i32_93 : i32 to vector<4x32xi32>
    %213 = arith.cmpi slt, %209, %212 : vector<4x32xi32>
    %c0_i32_94 = arith.constant 0 : i32
    %214 = arith.cmpi slt, %207, %c0_i32_94 : i32
    %215 = vector.broadcast %214 : i1 to vector<4x32xi1>
    %216 = vector.broadcast %215 : vector<4x32xi1> to vector<4x32xi1>
    %217 = arith.xori %213, %216 : vector<4x32xi1>
    %218 = arith.andi %217, %211 : vector<4x32xi1>
    %219 = vector.broadcast %207 : i32 to vector<4x32xi32>
    %220 = arith.addi %209, %219 : vector<4x32xi32>
    %221 = arith.select %218, %220, %209 : vector<4x32xi1>, vector<4x32xi32>
    %c1_i32_95 = arith.constant 1 : i32
    %222 = vector.broadcast %c1_i32_95 : i32 to vector<4x32xi32>
    %223 = arith.cmpi sge, %221, %222 : vector<4x32xi32>
    %cst_96 = arith.constant 0xFF800000 : f32
    %224 = vector.broadcast %cst_96 : f32 to vector<4x32xf32>
    %225 = arith.select %223, %204, %224 : vector<4x32xi1>, vector<4x32xf32>
    %cst_97 = arith.constant 0xFF800000 : f32
    %226 = vector.broadcast %cst_97 : f32 to vector<1x32xf32>
    %227 = vector.extract_strided_slice %201 {offsets = [1, 0], sizes = [3, 32], strides = [1, 1]} : vector<4x32xf32> to vector<3x32xf32>
    %228 = tpu.concatenate %227, %226 in 0 : vector<3x32xf32>, vector<1x32xf32> -> vector<4x32xf32>
    %229 = tpu.iota {dimensions = array<i32: 0>} : vector<4x32xi32>
    %c2_i32_98 = arith.constant 2 : i32
    %c0_i32_99 = arith.constant 0 : i32
    %230 = arith.cmpi eq, %c2_i32_98, %c0_i32_99 : i32
    %c1_i32_100 = arith.constant 1 : i32
    %231 = arith.select %230, %c1_i32_100, %c2_i32_98 : i32
    %232 = vector.broadcast %231 : i32 to vector<4x32xi32>
    %233 = arith.remsi %229, %232 : vector<4x32xi32>
    %c0_i32_101 = arith.constant 0 : i32
    %234 = vector.broadcast %c0_i32_101 : i32 to vector<4x32xi32>
    %235 = arith.cmpi ne, %233, %234 : vector<4x32xi32>
    %c0_i32_102 = arith.constant 0 : i32
    %236 = vector.broadcast %c0_i32_102 : i32 to vector<4x32xi32>
    %237 = arith.cmpi slt, %233, %236 : vector<4x32xi32>
    %c0_i32_103 = arith.constant 0 : i32
    %238 = arith.cmpi slt, %231, %c0_i32_103 : i32
    %239 = vector.broadcast %238 : i1 to vector<4x32xi1>
    %240 = vector.broadcast %239 : vector<4x32xi1> to vector<4x32xi1>
    %241 = arith.xori %237, %240 : vector<4x32xi1>
    %242 = arith.andi %241, %235 : vector<4x32xi1>
    %243 = vector.broadcast %231 : i32 to vector<4x32xi32>
    %244 = arith.addi %233, %243 : vector<4x32xi32>
    %245 = arith.select %242, %244, %233 : vector<4x32xi1>, vector<4x32xi32>
    %c1_i32_104 = arith.constant 1 : i32
    %246 = vector.broadcast %c1_i32_104 : i32 to vector<4x32xi32>
    %247 = arith.cmpi slt, %245, %246 : vector<4x32xi32>
    %cst_105 = arith.constant 0xFF800000 : f32
    %248 = vector.broadcast %cst_105 : f32 to vector<4x32xf32>
    %249 = arith.select %247, %228, %248 : vector<4x32xi1>, vector<4x32xf32>
    %250 = arith.maximumf %225, %249 : vector<4x32xf32>
    %251 = arith.maximumf %201, %250 : vector<4x32xf32>
    %cst_106 = arith.constant 0xFF800000 : f32
    %252 = vector.broadcast %cst_106 : f32 to vector<4x16xf32>
    %253 = vector.extract_strided_slice %251 {offsets = [0, 0], sizes = [4, 16], strides = [1, 1]} : vector<4x32xf32> to vector<4x16xf32>
    %254 = tpu.concatenate %252, %253 in 1 : vector<4x16xf32>, vector<4x16xf32> -> vector<4x32xf32>
    %cst_107 = arith.constant 0xFF800000 : f32
    %255 = vector.broadcast %cst_107 : f32 to vector<4x16xf32>
    %256 = vector.extract_strided_slice %251 {offsets = [0, 16], sizes = [4, 16], strides = [1, 1]} : vector<4x32xf32> to vector<4x16xf32>
    %257 = tpu.concatenate %256, %255 in 1 : vector<4x16xf32>, vector<4x16xf32> -> vector<4x32xf32>
    %258 = arith.maximumf %254, %257 : vector<4x32xf32>
    %259 = arith.maximumf %251, %258 : vector<4x32xf32>
    %cst_108 = arith.constant 0xFF800000 : f32
    %260 = vector.broadcast %cst_108 : f32 to vector<1x32xf32>
    %261 = vector.extract_strided_slice %259 {offsets = [0, 0], sizes = [3, 32], strides = [1, 1]} : vector<4x32xf32> to vector<3x32xf32>
    %262 = tpu.concatenate %260, %261 in 0 : vector<1x32xf32>, vector<3x32xf32> -> vector<4x32xf32>
    %263 = tpu.iota {dimensions = array<i32: 0>} : vector<4x32xi32>
    %c2_i32_109 = arith.constant 2 : i32
    %c0_i32_110 = arith.constant 0 : i32
    %264 = arith.cmpi eq, %c2_i32_109, %c0_i32_110 : i32
    %c1_i32_111 = arith.constant 1 : i32
    %265 = arith.select %264, %c1_i32_111, %c2_i32_109 : i32
    %266 = vector.broadcast %265 : i32 to vector<4x32xi32>
    %267 = arith.remsi %263, %266 : vector<4x32xi32>
    %c0_i32_112 = arith.constant 0 : i32
    %268 = vector.broadcast %c0_i32_112 : i32 to vector<4x32xi32>
    %269 = arith.cmpi ne, %267, %268 : vector<4x32xi32>
    %c0_i32_113 = arith.constant 0 : i32
    %270 = vector.broadcast %c0_i32_113 : i32 to vector<4x32xi32>
    %271 = arith.cmpi slt, %267, %270 : vector<4x32xi32>
    %c0_i32_114 = arith.constant 0 : i32
    %272 = arith.cmpi slt, %265, %c0_i32_114 : i32
    %273 = vector.broadcast %272 : i1 to vector<4x32xi1>
    %274 = vector.broadcast %273 : vector<4x32xi1> to vector<4x32xi1>
    %275 = arith.xori %271, %274 : vector<4x32xi1>
    %276 = arith.andi %275, %269 : vector<4x32xi1>
    %277 = vector.broadcast %265 : i32 to vector<4x32xi32>
    %278 = arith.addi %267, %277 : vector<4x32xi32>
    %279 = arith.select %276, %278, %267 : vector<4x32xi1>, vector<4x32xi32>
    %c1_i32_115 = arith.constant 1 : i32
    %280 = vector.broadcast %c1_i32_115 : i32 to vector<4x32xi32>
    %281 = arith.cmpi sge, %279, %280 : vector<4x32xi32>
    %cst_116 = arith.constant 0xFF800000 : f32
    %282 = vector.broadcast %cst_116 : f32 to vector<4x32xf32>
    %283 = arith.select %281, %262, %282 : vector<4x32xi1>, vector<4x32xf32>
    %cst_117 = arith.constant 0xFF800000 : f32
    %284 = vector.broadcast %cst_117 : f32 to vector<1x32xf32>
    %285 = vector.extract_strided_slice %259 {offsets = [1, 0], sizes = [3, 32], strides = [1, 1]} : vector<4x32xf32> to vector<3x32xf32>
    %286 = tpu.concatenate %285, %284 in 0 : vector<3x32xf32>, vector<1x32xf32> -> vector<4x32xf32>
    %287 = tpu.iota {dimensions = array<i32: 0>} : vector<4x32xi32>
    %c2_i32_118 = arith.constant 2 : i32
    %c0_i32_119 = arith.constant 0 : i32
    %288 = arith.cmpi eq, %c2_i32_118, %c0_i32_119 : i32
    %c1_i32_120 = arith.constant 1 : i32
    %289 = arith.select %288, %c1_i32_120, %c2_i32_118 : i32
    %290 = vector.broadcast %289 : i32 to vector<4x32xi32>
    %291 = arith.remsi %287, %290 : vector<4x32xi32>
    %c0_i32_121 = arith.constant 0 : i32
    %292 = vector.broadcast %c0_i32_121 : i32 to vector<4x32xi32>
    %293 = arith.cmpi ne, %291, %292 : vector<4x32xi32>
    %c0_i32_122 = arith.constant 0 : i32
    %294 = vector.broadcast %c0_i32_122 : i32 to vector<4x32xi32>
    %295 = arith.cmpi slt, %291, %294 : vector<4x32xi32>
    %c0_i32_123 = arith.constant 0 : i32
    %296 = arith.cmpi slt, %289, %c0_i32_123 : i32
    %297 = vector.broadcast %296 : i1 to vector<4x32xi1>
    %298 = vector.broadcast %297 : vector<4x32xi1> to vector<4x32xi1>
    %299 = arith.xori %295, %298 : vector<4x32xi1>
    %300 = arith.andi %299, %293 : vector<4x32xi1>
    %301 = vector.broadcast %289 : i32 to vector<4x32xi32>
    %302 = arith.addi %291, %301 : vector<4x32xi32>
    %303 = arith.select %300, %302, %291 : vector<4x32xi1>, vector<4x32xi32>
    %c1_i32_124 = arith.constant 1 : i32
    %304 = vector.broadcast %c1_i32_124 : i32 to vector<4x32xi32>
    %305 = arith.cmpi slt, %303, %304 : vector<4x32xi32>
    %cst_125 = arith.constant 0xFF800000 : f32
    %306 = vector.broadcast %cst_125 : f32 to vector<4x32xf32>
    %307 = arith.select %305, %286, %306 : vector<4x32xi1>, vector<4x32xf32>
    %308 = arith.maximumf %283, %307 : vector<4x32xf32>
    %309 = arith.maximumf %259, %308 : vector<4x32xf32>
    %cst_126 = arith.constant 0xFF800000 : f32
    %310 = vector.broadcast %cst_126 : f32 to vector<4x16xf32>
    %311 = vector.extract_strided_slice %309 {offsets = [0, 0], sizes = [4, 16], strides = [1, 1]} : vector<4x32xf32> to vector<4x16xf32>
    %312 = tpu.concatenate %310, %311 in 1 : vector<4x16xf32>, vector<4x16xf32> -> vector<4x32xf32>
    %cst_127 = arith.constant 0xFF800000 : f32
    %313 = vector.broadcast %cst_127 : f32 to vector<4x16xf32>
    %314 = vector.extract_strided_slice %309 {offsets = [0, 16], sizes = [4, 16], strides = [1, 1]} : vector<4x32xf32> to vector<4x16xf32>
    %315 = tpu.concatenate %314, %313 in 1 : vector<4x16xf32>, vector<4x16xf32> -> vector<4x32xf32>
    %316 = arith.maximumf %312, %315 : vector<4x32xf32>
    %317 = arith.maximumf %309, %316 : vector<4x32xf32>
    %cst_128 = arith.constant 0xFF800000 : f32
    %318 = vector.broadcast %cst_128 : f32 to vector<1x32xf32>
    %319 = vector.extract_strided_slice %317 {offsets = [0, 0], sizes = [3, 32], strides = [1, 1]} : vector<4x32xf32> to vector<3x32xf32>
    %320 = tpu.concatenate %318, %319 in 0 : vector<1x32xf32>, vector<3x32xf32> -> vector<4x32xf32>
    %321 = tpu.iota {dimensions = array<i32: 0>} : vector<4x32xi32>
    %c2_i32_129 = arith.constant 2 : i32
    %c0_i32_130 = arith.constant 0 : i32
    %322 = arith.cmpi eq, %c2_i32_129, %c0_i32_130 : i32
    %c1_i32_131 = arith.constant 1 : i32
    %323 = arith.select %322, %c1_i32_131, %c2_i32_129 : i32
    %324 = vector.broadcast %323 : i32 to vector<4x32xi32>
    %325 = arith.remsi %321, %324 : vector<4x32xi32>
    %c0_i32_132 = arith.constant 0 : i32
    %326 = vector.broadcast %c0_i32_132 : i32 to vector<4x32xi32>
    %327 = arith.cmpi ne, %325, %326 : vector<4x32xi32>
    %c0_i32_133 = arith.constant 0 : i32
    %328 = vector.broadcast %c0_i32_133 : i32 to vector<4x32xi32>
    %329 = arith.cmpi slt, %325, %328 : vector<4x32xi32>
    %c0_i32_134 = arith.constant 0 : i32
    %330 = arith.cmpi slt, %323, %c0_i32_134 : i32
    %331 = vector.broadcast %330 : i1 to vector<4x32xi1>
    %332 = vector.broadcast %331 : vector<4x32xi1> to vector<4x32xi1>
    %333 = arith.xori %329, %332 : vector<4x32xi1>
    %334 = arith.andi %333, %327 : vector<4x32xi1>
    %335 = vector.broadcast %323 : i32 to vector<4x32xi32>
    %336 = arith.addi %325, %335 : vector<4x32xi32>
    %337 = arith.select %334, %336, %325 : vector<4x32xi1>, vector<4x32xi32>
    %c1_i32_135 = arith.constant 1 : i32
    %338 = vector.broadcast %c1_i32_135 : i32 to vector<4x32xi32>
    %339 = arith.cmpi sge, %337, %338 : vector<4x32xi32>
    %cst_136 = arith.constant 0xFF800000 : f32
    %340 = vector.broadcast %cst_136 : f32 to vector<4x32xf32>
    %341 = arith.select %339, %320, %340 : vector<4x32xi1>, vector<4x32xf32>
    %cst_137 = arith.constant 0xFF800000 : f32
    %342 = vector.broadcast %cst_137 : f32 to vector<1x32xf32>
    %343 = vector.extract_strided_slice %317 {offsets = [1, 0], sizes = [3, 32], strides = [1, 1]} : vector<4x32xf32> to vector<3x32xf32>
    %344 = tpu.concatenate %343, %342 in 0 : vector<3x32xf32>, vector<1x32xf32> -> vector<4x32xf32>
    %345 = tpu.iota {dimensions = array<i32: 0>} : vector<4x32xi32>
    %c2_i32_138 = arith.constant 2 : i32
    %c0_i32_139 = arith.constant 0 : i32
    %346 = arith.cmpi eq, %c2_i32_138, %c0_i32_139 : i32
    %c1_i32_140 = arith.constant 1 : i32
    %347 = arith.select %346, %c1_i32_140, %c2_i32_138 : i32
    %348 = vector.broadcast %347 : i32 to vector<4x32xi32>
    %349 = arith.remsi %345, %348 : vector<4x32xi32>
    %c0_i32_141 = arith.constant 0 : i32
    %350 = vector.broadcast %c0_i32_141 : i32 to vector<4x32xi32>
    %351 = arith.cmpi ne, %349, %350 : vector<4x32xi32>
    %c0_i32_142 = arith.constant 0 : i32
    %352 = vector.broadcast %c0_i32_142 : i32 to vector<4x32xi32>
    %353 = arith.cmpi slt, %349, %352 : vector<4x32xi32>
    %c0_i32_143 = arith.constant 0 : i32
    %354 = arith.cmpi slt, %347, %c0_i32_143 : i32
    %355 = vector.broadcast %354 : i1 to vector<4x32xi1>
    %356 = vector.broadcast %355 : vector<4x32xi1> to vector<4x32xi1>
    %357 = arith.xori %353, %356 : vector<4x32xi1>
    %358 = arith.andi %357, %351 : vector<4x32xi1>
    %359 = vector.broadcast %347 : i32 to vector<4x32xi32>
    %360 = arith.addi %349, %359 : vector<4x32xi32>
    %361 = arith.select %358, %360, %349 : vector<4x32xi1>, vector<4x32xi32>
    %c1_i32_144 = arith.constant 1 : i32
    %362 = vector.broadcast %c1_i32_144 : i32 to vector<4x32xi32>
    %363 = arith.cmpi slt, %361, %362 : vector<4x32xi32>
    %cst_145 = arith.constant 0xFF800000 : f32
    %364 = vector.broadcast %cst_145 : f32 to vector<4x32xf32>
    %365 = arith.select %363, %344, %364 : vector<4x32xi1>, vector<4x32xf32>
    %366 = arith.maximumf %341, %365 : vector<4x32xf32>
    %367 = arith.maximumf %317, %366 : vector<4x32xf32>
    %cst_146 = arith.constant 0xFF800000 : f32
    %368 = vector.broadcast %cst_146 : f32 to vector<4x16xf32>
    %369 = vector.extract_strided_slice %367 {offsets = [0, 0], sizes = [4, 16], strides = [1, 1]} : vector<4x32xf32> to vector<4x16xf32>
    %370 = tpu.concatenate %368, %369 in 1 : vector<4x16xf32>, vector<4x16xf32> -> vector<4x32xf32>
    %cst_147 = arith.constant 0xFF800000 : f32
    %371 = vector.broadcast %cst_147 : f32 to vector<4x16xf32>
    %372 = vector.extract_strided_slice %367 {offsets = [0, 16], sizes = [4, 16], strides = [1, 1]} : vector<4x32xf32> to vector<4x16xf32>
    %373 = tpu.concatenate %372, %371 in 1 : vector<4x16xf32>, vector<4x16xf32> -> vector<4x32xf32>
    %374 = arith.maximumf %370, %373 : vector<4x32xf32>
    %375 = arith.maximumf %367, %374 : vector<4x32xf32>
    %376 = tpu.concatenate %201, %259, %317, %375 in 1 : vector<4x32xf32>, vector<4x32xf32>, vector<4x32xf32>, vector<4x32xf32> -> vector<4x128xf32>
    %377 = arith.truncf %376 : vector<4x128xf32> to vector<4x128xbf16>
    %c1104 = arith.constant 1104 : index
    %c0_148 = arith.constant 0 : index
    %378 = vector.load %arg2[%c1104, %c0_148] : memref<1296x128xbf16, #tpu.memory_space<vmem>>, vector<128x64xbf16>
    %cst_149 = arith.constant dense<0.000000e+00> : vector<4x64xf32>
    %379 = tpu.matmul %377, %378, %cst_149 {dimension_numbers = #tpu.dot_dimension_numbers<[1], [0], [0], [1], [0, 0, 1, 1], [], []>} : vector<4x128xbf16>, vector<128x64xbf16>, vector<4x64xf32> -> vector<4x64xf32>
    %c9 = arith.constant 9 : index
    %c0_150 = arith.constant 0 : index
    %380 = vector.load %arg3[%c9, %c0_150] : memref<11x128xf32, #tpu.memory_space<vmem>>, vector<1x64xf32>
    %381 = vector.broadcast %380 : vector<1x64xf32> to vector<4x64xf32>
    %382 = arith.addf %379, %381 : vector<4x64xf32>
    %cst_151 = arith.constant 0.000000e+00 : f32
    %383 = vector.broadcast %cst_151 : f32 to vector<4x64xf32>
    %384 = arith.subf %383, %382 : vector<4x64xf32>
    %385 = math.exp %384 : vector<4x64xf32>
    %cst_152 = arith.constant 1.000000e+00 : f32
    %386 = vector.broadcast %cst_152 : f32 to vector<4x64xf32>
    %387 = arith.addf %386, %385 : vector<4x64xf32>
    %cst_153 = arith.constant 1.000000e+00 : f32
    %388 = vector.broadcast %cst_153 : f32 to vector<4x64xf32>
    %389 = arith.divf %388, %387 : vector<4x64xf32>
    %390 = arith.mulf %382, %389 : vector<4x64xf32>
    %391 = arith.truncf %390 : vector<4x64xf32> to vector<4x64xbf16>
    %c1232 = arith.constant 1232 : index
    %c0_154 = arith.constant 0 : index
    %392 = vector.load %arg2[%c1232, %c0_154] : memref<1296x128xbf16, #tpu.memory_space<vmem>>, vector<64x128xbf16>
    %cst_155 = arith.constant dense<0.000000e+00> : vector<4x128xf32>
    %393 = tpu.matmul %391, %392, %cst_155 {dimension_numbers = #tpu.dot_dimension_numbers<[1], [0], [0], [1], [0, 0, 1, 1], [], []>} : vector<4x64xbf16>, vector<64x128xbf16>, vector<4x128xf32> -> vector<4x128xf32>
    %c10 = arith.constant 10 : index
    %c0_156 = arith.constant 0 : index
    %394 = vector.load %arg3[%c10, %c0_156] : memref<11x128xf32, #tpu.memory_space<vmem>>, vector<1x128xf32>
    %395 = vector.broadcast %394 : vector<1x128xf32> to vector<4x128xf32>
    %396 = arith.addf %393, %395 : vector<4x128xf32>
    %c0_157 = arith.constant 0 : index
    %c0_158 = arith.constant 0 : index
    %c0_159 = arith.constant 0 : index
    %397 = vector.load %arg4[%c0_157, %c0_158, %c0_159] : memref<1x4x128xf32, #tpu.memory_space<vmem>>, vector<1x4x128xf32>
    %398 = vector.shape_cast %397 : vector<1x4x128xf32> to vector<4x128xf32>
    %399 = vector.shape_cast %396 : vector<4x128xf32> to vector<1x4x128xf32>
    tpu.vector_store %arg4[%c0_157, %c0_158, %c0_159], %399 {strides = array<i32>} : memref<1x4x128xf32, #tpu.memory_space<vmem>>, vector<1x4x128xf32>,
    return
  }
  func.func @transform_0(%arg0: i32) -> (i32, i32, i32) {
    %c0_i32 = arith.constant 0 : i32
    %c0_i32_0 = arith.constant 0 : i32
    %c0_i32_1 = arith.constant 0 : i32
    return %arg0, %c0_i32, %c0_i32_0 : i32, i32, i32
  }
  func.func @transform_1(%arg0: i32) -> (i32, i32) {
    %c0_i32 = arith.constant 0 : i32
    %c0_i32_0 = arith.constant 0 : i32
    %c0_i32_1 = arith.constant 0 : i32
    return %c0_i32, %c0_i32_0 : i32, i32
  }
  func.func @transform_2(%arg0: i32) -> (i32, i32) {
    %c0_i32 = arith.constant 0 : i32
    %c0_i32_0 = arith.constant 0 : i32
    %c0_i32_1 = arith.constant 0 : i32
    return %c0_i32, %c0_i32_0 : i32, i32
  }
  func.func @transform_3(%arg0: i32) -> (i32, i32, i32) {
    %c0_i32 = arith.constant 0 : i32
    %c0_i32_0 = arith.constant 0 : i32
    %c0_i32_1 = arith.constant 0 : i32
    return %arg0, %c0_i32, %c0_i32_0 : i32, i32, i32
  }
}

</mosaic_0001>

<bundles_post_ra>
// kernel: yolov5_forward.1
= control target key start
LH: loop header
LB: loop body
LE: loop exit
PB: predicated region body
PF: predicated region fallthrough
CT: control target
= control target key end

     0   :  { %8 = vsyncpa [#allocation3], 0  ;;  %s1936_s15 = smov [#allocation2]   ;;  %s1937_s17 = smov 64   ;;  %s2104_s0 = inlined_call_operand.vmem [shape: bf16[1,32,64], index: 0, kind: input, shape index: {}]   ;;  %s2105_s1 = inlined_call_operand.hbm [shape: bf16[1296,128], index: 1, kind: input, shape index: {}]   ;;  %s2106_s2 = inlined_call_operand.vmem [shape: f32[11,128], index: 2, kind: input, shape index: {}]   ;;  %s2107_s3 = inlined_call_operand.vmem [shape: f32[1,4,128], index: 3, kind: output, shape index: {}]  }
   0x1   :  { %s15_s14 = sshll.u32 %s2105_s1, 4  ;;  %s17_s16 = sshll.u32 %s1936_s15, 4  ;;  %s16_s14 = int_to_ptr.hbm [resolvable:$true] %s15_s14  ;;  %s18_s16 = int_to_ptr.vmem [resolvable:$true] %s17_s16 }
   0x2   :  { %s1938_s18 = smov 4  }
   0x3   :  { %23 = dma.hbm_to_vmem [thread:$0]  %s16_s14, 10368, %s18_s16, [#allocation3], %s1937_s17, %s1937_s17, %s1938_s18  }
   0x4   :  { %1934 = dma.done.wait [#allocation3], 10368  }
   0x5   :  { %1935 = vsyncadd [#allocation3], 4294956928  ;;  %v1767_v0 = vld [vmem:[%s2104_s0 + $0x8] sm:$0xff]  ;;  %v1766_v1 = vld [vmem:[%s2104_s0] sm:$0xff]  ;;  %vm54_vm0 = vcmask 261120   ;;  %vm128_vm1 = vcmask 523264  }
   0x6   :  { %88 = vmatpush.bf16.msra.mxu1 %v1767_v0  ;;  %64 = vmatpush.bf16.msra.mxu0 %v1767_v0  ;;  %v1769_v2 = vld [vmem:[#allocation2 + $0x8] sm:$0xff]  ;;  %v1768_v3 = vld [vmem:[#allocation2] sm:$0xff]  ;;  %v1770_v4 = vld [vmem:[#allocation2 + $0x10] sm:$0xff]  ;;  %vm304_vm10 = vcmask 130048   ;;  %s1939_s29 = smov 32   ;;  %s1940_s13 = smov 112  }
   0x7   :  { %112 = vmatpush.bf16.msra.mxu2 %v1767_v0  ;;  %v1778_v5 = vld [vmem:[#allocation2 + $0x50] sm:$0xff]  ;;  %v1777_v6 = vld [vmem:[#allocation2 + $0x48] sm:$0xff]  ;;  %v1776_v7 = vld [vmem:[#allocation2 + $0x40] sm:$0xff]  ;;  %s1941_s14 = smov 16   ;;  %s1942_s15 = smov 96  }
   0x8   :  { %234 = vmatpush.bf16.msra.mxu3 %v1778_v5  ;;  %v1775_v8 = vld [vmem:[#allocation2 + $0x38] sm:$0xff]  ;;  %v1774_v9 = vld [vmem:[#allocation2 + $0x30] sm:$0xff]  ;;  %v1773_v10 = vld [vmem:[#allocation2 + $0x28] sm:$0xff] }
   0x9   :  { %v1772_v12 = vld [vmem:[#allocation2 + $0x20] sm:$0xff]  ;;  %v1771_v15 = vld [vmem:[#allocation2 + $0x18] sm:$0xff]  ;;  %v1782_v16 = vld [vmem:[#allocation2 + $0x70] sm:$0xff] }
   0xa   :  { %89 = vmatpush.bf16.msra.mxu1 %v1766_v1  ;;  %65 = vmatpush.bf16.msra.mxu0 %v1766_v1  ;;  %v1781_v17 = vld [vmem:[#allocation2 + $0x68] sm:$0xff]  ;;  %v1780_v18 = vld [vmem:[#allocation2 + $0x60] sm:$0xff]  ;;  %v1779_v19 = vld [vmem:[#allocation2 + $0x58] sm:$0xff] }
   0xb   :  { %113 = vmatpush.bf16.msra.mxu2 %v1766_v1  ;;  %v1855_v33 = vld [vmem:[%s2106_s2] ss:$0 sm:$0xff] }
   0xc   :  { %235 = vmatpush.bf16.msra.mxu3 %v1777_v6 }
   0xd   :  { %1456 = vmatmul.msk.bf16.vlgmr.msra.gmra.mxu1 %vm54_vm0, %v1769_v2  ;;  %1451 = vmatmul.msk.bf16.vlgmr.msra.gmra.mxu0 %vm54_vm0, %v1768_v3 }
   0xe   :  { %1461 = vmatmul.msk.bf16.vlgmr.msra.gmra.mxu2 %vm54_vm0, %v1770_v4 }
  0x10   :  { %236 = vmatpush.bf16.msra.mxu3 %v1776_v7  ;;  %v321_v7 = vld [vmem:[#allocation2 + $0x80] sm:$0xf] }
  0x14   :  { %237 = vmatpush.bf16.msra.mxu3 %v1775_v8  ;;  %v303_v8 = vld [vmem:[#allocation2 + $0x78] sm:$0xf] }
  0x18   :  { %238 = vmatpush.bf16.msra.mxu3 %v1774_v9  ;;  %v338_v9 = vld [vmem:[#allocation2 + $0x88] sm:$0xf] }
  0x1c   :  { %239 = vmatpush.bf16.msra.mxu3 %v1773_v10  ;;  %v1790_v10 = vld [vmem:[#allocation2 + $0xc8] sm:$0xff] }
  0x20   :  { %240 = vmatpush.bf16.msra.mxu3 %v1772_v12  ;;  %v1789_v12 = vld [vmem:[#allocation2 + $0xc0] sm:$0xff] }
  0x24   :  { %241 = vmatpush.bf16.msra.mxu3 %v1771_v15  ;;  %v1792_v15 = vld [vmem:[#allocation2 + $0xd8] sm:$0xff] }
  0x28   :  { %252 = vmatpush.bf16.msrb.mxu3 %v1782_v16  ;;  %v1787_v16 = vld [vmem:[#allocation2 + $0xb0] sm:$0xff] }
  0x2c   :  { %253 = vmatpush.bf16.msrb.mxu3 %v1781_v17  ;;  %v1791_v17 = vld [vmem:[#allocation2 + $0xd0] sm:$0xff] }
  0x30   :  { %254 = vmatpush.bf16.msrb.mxu3 %v1780_v18  ;;  %v1786_v18 = vld [vmem:[#allocation2 + $0xa8] sm:$0xff] }
  0x34   :  { %255 = vmatpush.bf16.msrb.mxu3 %v1779_v19 }
  0x8a   :  { %v91_v11 = vpop.f32.mrf.mxu1  ;;  %v67_v20 = vpop.f32.mrf.mxu0 }
  0x91   :  { %v115_v28 = vpop.f32.mrf.mxu2 }
  0x92   :  { %v93_v13 = vpop.f32.mrf.mxu1  ;;  %v69_v24 = vpop.f32.mrf.mxu0 }
  0x93   :  { %v1850_v14 = vpack.i.bf16 %v93_v13, %v91_v11  ;;  %v1794_v11 = vld [vmem:[#allocation2 + $0xe8] sm:$0xff]  ;;  %v1793_v13 = vld [vmem:[#allocation2 + $0xe0] sm:$0xff] }
  0x95   :  { %1851 = vrot.lane.b32.xlu0 %v1850_v14, %s1937_s17  ;;  %v1788_v14 = vld [vmem:[#allocation2 + $0xb8] sm:$0xff] }
  0x99   :  { %v117_v29 = vpop.f32.mrf.mxu2 }
  0x9a   :  { %v132_v30 = vpack.c.bf16 %v117_v29, %v115_v28  ;;  %v1783_v28 = vld [vmem:[#allocation2 + $0x90] sm:$0xff] }
 0x107   :  { %v1852_v21 = vpop.permute.xlu0 %1851 }
 0x108   :  { %v1854_v22 = vunpack.i.h.bf16 %v1852_v21  ;;  %v1853_v23 = vunpack.i.l.bf16 %v1852_v21 }
 0x10a   :  { %v129_v25 = vsel %vm128_vm1, %v67_v20, %v1853_v23  ;;  %v130_v26 = vsel %vm128_vm1, %v69_v24, %v1854_v22  ;;  %v1785_v20 = vld [vmem:[#allocation2 + $0xa0] sm:$0xff]  ;;  %v1784_v23 = vld [vmem:[#allocation2 + $0x98] sm:$0xff] }
 0x10b   :  { %v131_v27 = vpack.c.bf16 %v130_v26, %v129_v25 }
 0x10d   :  { %242 = vmatmul.bf16.vlgmr.msra.gmra.mxu3 %v131_v27 }
 0x11d   :  { %1510 = vmatmul.msk.bf16.vlgmr.msrb.gmra.mxu3 %vm128_vm1, %v132_v30 }
 0x190   :  { %v243_v31 = vpop.f32.mrf.mxu3 }
 0x191   :  { %v244_v34 = vadd.f32 %v1855_v33, %v243_v31 }
 0x198   :  { %v245_v32 = vpop.f32.mrf.mxu3 }
 0x199   :  { %v246_v39 = vadd.f32 %v1855_v33, %v245_v32 }
 0x1a0   :  { %v257_v35 = vpop.f32.mrf.mxu3 }
 0x1a1   :  { %v258_v36 = vadd.f32 %v257_v35, %v244_v34  ;;  %v1798_v34 = vld [vmem:[#allocation2 + $0x180] sm:$0xff] }
 0x1a2   :  { %v1802_v35 = vld [vmem:[#allocation2 + $0x1a0] sm:$0xff]  ;;  %551 = vmatpush.bf16.msra.mxu3 %v1798_v34 }
 0x1a3   :  { %v262_v37 = vsub.f32 0.0, %v258_v36 }
 0x1a5   :  { %v264_v38 = vmul.f32 1.442695, %v262_v37  ;;  %v1801_v37 = vld [vmem:[#allocation2 + $0x198] sm:$0xff] }
 0x1a7   :  { %1866 = vpow2.f32 %v264_v38  ;;  %v1856_v38 = vld [vmem:[%s2106_s2 + $0x1] ss:$0 sm:$0xff] }
 0x1a8   :  { %v259_v40 = vpop.f32.mrf.mxu3 }
 0x1a9   :  { %v260_v41 = vadd.f32 %v259_v40, %v246_v39  ;;  %v1796_v39 = vld [vmem:[#allocation2 + $0x170] sm:$0xff] }
 0x1aa   :  { %v1800_v40 = vld [vmem:[#allocation2 + $0x190] sm:$0xff] }
 0x1ab   :  { %v263_v42 = vsub.f32 0.0, %v260_v41 }
 0x1ad   :  { %v1867_v43 = vpop.eup %1866  ;;  %v266_v44 = vmul.f32 1.442695, %v263_v42 }
 0x1ae   :  { %v268_v45 = vadd.f32 1.0, %v1867_v43 }
 0x1af   :  { %1868 = vpow2.f32 %v266_v44  ;;  %v1795_v44 = vld [vmem:[#allocation2 + $0x168] sm:$0xff] }
 0x1b0   :  { %1870 = vrcp.f32 %v268_v45  ;;  %v281_v55 = vand.u32 2147483648, %v268_v45  ;;  %vm275_vm3 = vweird.f32 %v268_v45  ;;  %v279_v56 = vand.u32 2147483647, %v268_v45 }
 0x1b2   :  { %v282_v62 = vor.u32 1.1754944e-38, %v281_v55  ;;  %vm280_vm6 = vcmp.eq.f32.partialorder %v279_v56, 8.507059e+37 }
 0x1b5   :  { %v1869_v46 = vpop.eup %1868 }
 0x1b6   :  { %v1871_v47 = vpop.eup %1870  ;;  %v269_v48 = vadd.f32 1.0, %v1869_v46 }
 0x1b7   :  { %v271_v49 = vmul.f32 %v1871_v47, %v268_v45  ;;  %vm276_vm2 = vweird.f32 %v1871_v47  ;;  %v1799_v45 = vld [vmem:[#allocation2 + $0x188] sm:$0xff] }
 0x1b8   :  { %1872 = vrcp.f32 %v269_v48  ;;  %vm277_vm4 = vmor %vm275_vm3, %vm276_vm2  ;;  %v296_v58 = vand.u32 2147483648, %v269_v48  ;;  %v294_v61 = vand.u32 2147483647, %v269_v48  ;;  %vm290_vm7 = vweird.f32 %v269_v48 }
 0x1b9   :  { %v272_v50 = vsub.f32 1.0, %v271_v49 }
 0x1ba   :  { %v297_v1 = vor.u32 1.1754944e-38, %v296_v58  ;;  %vm295_vm9 = vcmp.eq.f32.partialorder %v294_v61, 8.507059e+37 }
 0x1bb   :  { %v273_v51 = vmul.f32 %v1871_v47, %v272_v50 }
 0x1bd   :  { %v274_v53 = vadd.f32 %v1871_v47, %v273_v51 }
 0x1be   :  { %v1873_v52 = vpop.eup %1872 }
 0x1bf   :  { %v286_v54 = vmul.f32 %v1873_v52, %v269_v48  ;;  %v278_v59 = vsel %vm277_vm4, %v1871_v47, %v274_v53  ;;  %vm291_vm5 = vweird.f32 %v1873_v52 }
 0x1c0   :  { %v283_v0 = vsel %vm280_vm6, %v282_v62, %v278_v59  ;;  %vm292_vm8 = vmor %vm290_vm7, %vm291_vm5 }
 0x1c1   :  { %v287_v57 = vsub.f32 1.0, %v286_v54  ;;  %v300_v4 = vmul.f32 %v283_v0, %v258_v36  ;;  %v1797_v36 = vld [vmem:[#allocation2 + $0x178] sm:$0xff] }
 0x1c2   :  { %552 = vmatpush.bf16.msra.mxu3 %v1797_v36 }
 0x1c3   :  { %v288_v60 = vmul.f32 %v1873_v52, %v287_v57 }
 0x1c5   :  { %v289_v63 = vadd.f32 %v1873_v52, %v288_v60 }
 0x1c6   :  { %553 = vmatpush.bf16.msra.mxu3 %v1796_v39 }
 0x1c7   :  { %v293_v2 = vsel %vm292_vm8, %v1873_v52, %v289_v63  ;;  %v1857_v63 = vld [vmem:[%s2106_s2 + $0x4] ss:$0 sm:$0xff] }
 0x1c8   :  { %v298_v3 = vsel %vm295_vm9, %v297_v1, %v293_v2 }
 0x1c9   :  { %v301_v5 = vmul.f32 %v298_v3, %v260_v41  ;;  %v1858_v3 = vld [vmem:[%s2106_s2 + $0x3] ss:$0 sm:$0xff] }
 0x1ca   :  { %554 = vmatpush.bf16.msra.mxu3 %v1795_v44 }
 0x1cb   :  { %v302_v6 = vpack.c.bf16 %v301_v5, %v300_v4  ;;  %v1804_v4 = vld [vmem:[#allocation2 + $0x1b0] sm:$0xff] }
 0x1cd   :  { %315 = vmatpush.bf16.msrb.mxu1 %v302_v6  ;;  %332 = vmatpush.bf16.msrb.mxu2 %v302_v6 }
 0x1ce   :  { %349 = vmatpush.bf16.msrb.mxu0 %v302_v6 }
 0x1d0   :  { %1512 = vmatmul.msk.bf16.vlgmr.msrb.gmra.mxu2 %vm304_vm10, %v321_v7  ;;  %1511 = vmatmul.msk.bf16.vlgmr.msrb.gmra.mxu1 %vm304_vm10, %v303_v8  ;;  %v1803_v8 = vld [vmem:[#allocation2 + $0x1a8] sm:$0xff] }
 0x1d1   :  { %1513 = vmatmul.msk.bf16.vlgmr.msrb.gmra.mxu0 %vm304_vm10, %v338_v9  ;;  %463 = vmatpush.bf16.msra.mxu1 %v1790_v10 }
 0x1d2   :  { %480 = vmatpush.bf16.msra.mxu2 %v1794_v11  ;;  %618 = vmatpush.bf16.msra.mxu0 %v1802_v35 }
 0x1d5   :  { %464 = vmatpush.bf16.msra.mxu1 %v1789_v12 }
 0x1d6   :  { %481 = vmatpush.bf16.msra.mxu2 %v1793_v13  ;;  %619 = vmatpush.bf16.msra.mxu0 %v1801_v37 }
 0x1d9   :  { %465 = vmatpush.bf16.msra.mxu1 %v1788_v14 }
 0x1da   :  { %482 = vmatpush.bf16.msra.mxu2 %v1792_v15  ;;  %620 = vmatpush.bf16.msra.mxu0 %v1800_v40 }
 0x1dd   :  { %466 = vmatpush.bf16.msra.mxu1 %v1787_v16 }
 0x1de   :  { %483 = vmatpush.bf16.msra.mxu2 %v1791_v17  ;;  %621 = vmatpush.bf16.msra.mxu0 %v1799_v45 }
 0x1e1   :  { %467 = vmatpush.bf16.msra.mxu1 %v1786_v18 }
 0x1e2   :  { %676 = vmatpush.bf16.msrb.mxu2 %v1804_v4 }
 0x1e5   :  { %468 = vmatpush.bf16.msra.mxu1 %v1785_v20 }
 0x1e6   :  { %677 = vmatpush.bf16.msrb.mxu2 %v1803_v8 }
 0x1e9   :  { %469 = vmatpush.bf16.msra.mxu1 %v1784_v23 }
 0x1ed   :  { %470 = vmatpush.bf16.msra.mxu1 %v1783_v28 }
 0x24d   :  { %v317_v19 = vpop.f32.mrf.mxu1 }
 0x24e   :  { %v351_v21 = vpop.f32.mrf.mxu0 }
 0x24f   :  { %v361_v22 = vpack.c.bf16 %v351_v21, %v351_v21 }
 0x251   :  { %1562 = vmatmul.msk.bf16.vlgmr.msra.gmra.mxu2 %vm128_vm1, %v361_v22 }
 0x253   :  { %v334_v24 = vpop.f32.mrf.mxu2 }
 0x254   :  { %356 = vrot.lane.b32.xlu0 %v334_v24, %s1937_s17 }
 0x255   :  { %v319_v25 = vpop.f32.mrf.mxu1 }
 0x256   :  { %v353_v26 = vpop.f32.mrf.mxu0 }
 0x25b   :  { %v336_v27 = vpop.f32.mrf.mxu2 }
 0x2c6   :  { %v357_v29 = vpop.permute.xlu0 %356 }
 0x2c7   :  { %v359_v30 = vsel %vm128_vm1, %v317_v19, %v357_v29 }
 0x2c8   :  { %v360_v31 = vpack.c.bf16 %v359_v30, %v359_v30 }
 0x2ca   :  { %471 = vmatmul.bf16.vlgmr.msra.gmra.mxu1 %v360_v31 }
 0x2d4   :  { %v485_v32 = vpop.f32.mrf.mxu2 }
 0x2dc   :  { %v487_v33 = vpop.f32.mrf.mxu2 }
 0x347   :  { %v472_v41 = vpop.f32.mrf.mxu1 }
 0x348   :  { %v473_v42 = vadd.f32 %v1856_v38, %v472_v41 }
 0x34a   :  { %v486_v43 = vadd.f32 %v485_v32, %v473_v42 }
 0x34c   :  { %v489_v46 = vsub.f32 0.0, %v486_v43 }
 0x34e   :  { %v490_v47 = vmul.f32 1.442695, %v489_v46 }
 0x34f   :  { %v474_v48 = vpop.f32.mrf.mxu1 }
 0x350   :  { %1874 = vpow2.f32 %v490_v47 }
 0x356   :  { %v1875_v49 = vpop.eup %1874 }
 0x357   :  { %v492_v50 = vadd.f32 1.0, %v1875_v49  ;;  %v1810_v49 = vld [vmem:[#allocation2 + $0x1e0] sm:$0xff] }
 0x358   :  { %796 = vmatpush.bf16.msrb.mxu3 %v1810_v49 }
 0x359   :  { %1876 = vrcp.f32 %v492_v50  ;;  %v504_v54 = vand.u32 2147483648, %v492_v50  ;;  %v502_v56 = vand.u32 2147483647, %v492_v50  ;;  %vm498_vm12 = vweird.f32 %v492_v50 }
 0x35b   :  { %v505_v58 = vor.u32 1.1754944e-38, %v504_v54  ;;  %vm503_vm14 = vcmp.eq.f32.partialorder %v502_v56, 8.507059e+37  ;;  %v708_v56 = vlaneseq }
 0x35f   :  { %v1877_v51 = vpop.eup %1876 }
 0x360   :  { %v494_v52 = vmul.f32 %v1877_v51, %v492_v50  ;;  %vm499_vm11 = vweird.f32 %v1877_v51 }
 0x361   :  { %vm500_vm13 = vmor %vm498_vm12, %vm499_vm11 }
 0x362   :  { %v495_v53 = vsub.f32 1.0, %v494_v52 }
 0x364   :  { %v496_v55 = vmul.f32 %v1877_v51, %v495_v53  ;;  %v1808_v53 = vld [vmem:[#allocation2 + $0x1d0] sm:$0xff] }
 0x366   :  { %v497_v57 = vadd.f32 %v1877_v51, %v496_v55 }
 0x368   :  { %v501_v59 = vsel %vm500_vm13, %v1877_v51, %v497_v57  ;;  %v1809_v51 = vld [vmem:[#allocation2 + $0x1d8] sm:$0xff] }
 0x369   :  { %v506_v60 = vsel %vm503_vm14, %v505_v58, %v501_v59  ;;  %797 = vmatpush.bf16.msrb.mxu3 %v1809_v51  ;;  %vm706_vm14 = vcmask 1040384  }
 0x36a   :  { %v508_v61 = vmul.f32 %v506_v60, %v486_v43  ;;  %v1859_v43 = vld [vmem:[%s2106_s2 + $0x5] ss:$0 sm:$0xff] }
 0x36c   :  { %v509_v62 = vpack.c.bf16 %v508_v61, %v508_v61  ;;  %v2010_v61 = vshrl.u32 %v708_v56, 7 }
 0x36d   :  { %798 = vmatpush.bf16.msrb.mxu3 %v1808_v53 }
 0x36e   :  { %1579 = vmatmul.msk.bf16.vlgmr.msra.gmra.mxu3 %vm128_vm1, %v509_v62  ;;  %1596 = vmatmul.msk.bf16.vlgmr.msra.gmra.mxu0 %vm128_vm1, %v509_v62 }
 0x3eb   :  { %v623_v0 = vpop.f32.mrf.mxu0 }
 0x3ec   :  { %v624_v1 = vadd.f32 %v1857_v63, %v623_v0 }
 0x3ee   :  { %v627_v2 = vsub.f32 0.0, %v624_v1 }
 0x3f0   :  { %v628_v5 = vmul.f32 1.442695, %v627_v2 }
 0x3f1   :  { %v556_v6 = vpop.f32.mrf.mxu3 }
 0x3f2   :  { %1878 = vpow2.f32 %v628_v5  ;;  %v557_v7 = vadd.f32 %v1858_v3, %v556_v6  ;;  %v907_v5 = vld [vmem:[#allocation2 + $0xf0] sm:$0x3] }
 0x3f3   :  { %v625_v9 = vpop.f32.mrf.mxu0 }
 0x3f4   :  { %v560_v10 = vsub.f32 0.0, %v557_v7 }
 0x3f6   :  { %v561_v11 = vmul.f32 1.442695, %v560_v10 }
 0x3f8   :  { %v1879_v12 = vpop.eup %1878  ;;  %1880 = vpow2.f32 %v561_v11  ;;  %v1807_v11 = vld [vmem:[#allocation2 + $0x1c8] sm:$0xff] }
 0x3f9   :  { %v630_v13 = vadd.f32 1.0, %v1879_v12  ;;  %v558_v14 = vpop.f32.mrf.mxu3  ;;  %799 = vmatpush.bf16.msrb.mxu3 %v1807_v11  ;;  %v1806_v12 = vld [vmem:[#allocation2 + $0x1c0] sm:$0xff]  ;;  %v1820_v11 = vld [vmem:[#allocation2 + $0x130] sm:$0xff] }
 0x3fb   :  { %1882 = vrcp.f32 %v630_v13  ;;  %v642_v20 = vand.u32 2147483648, %v630_v13  ;;  %v640_v22 = vand.u32 2147483647, %v630_v13  ;;  %vm636_vm2 = vweird.f32 %v630_v13 }
 0x3fd   :  { %v643_v26 = vor.u32 1.1754944e-38, %v642_v20  ;;  %vm641_vm4 = vcmp.eq.f32.partialorder %v640_v22, 8.507059e+37  ;;  %800 = vmatpush.bf16.msrb.mxu3 %v1806_v12  ;;  %v1813_v20 = vld [vmem:[#allocation2 + $0x1f8] sm:$0xff]  ;;  %v1824_v12 = vld [vmem:[#allocation2 + $0x150] sm:$0xff] }
 0x3fe   :  { %v1881_v15 = vpop.eup %1880 }
 0x3ff   :  { %v563_v16 = vadd.f32 1.0, %v1881_v15 }
 0x401   :  { %v1883_v17 = vpop.eup %1882  ;;  %1884 = vrcp.f32 %v563_v16  ;;  %v575_v30 = vand.u32 2147483648, %v563_v16  ;;  %v573_v33 = vand.u32 2147483647, %v563_v16  ;;  %vm569_vm6 = vweird.f32 %v563_v16 }
 0x402   :  { %v632_v18 = vmul.f32 %v1883_v17, %v630_v13  ;;  %vm637_vm15 = vweird.f32 %v1883_v17  ;;  %v1805_v13 = vld [vmem:[#allocation2 + $0x1b8] sm:$0xff] }
 0x403   :  { %vm638_vm3 = vmor %vm636_vm2, %vm637_vm15  ;;  %v576_v36 = vor.u32 1.1754944e-38, %v575_v30  ;;  %vm574_vm8 = vcmp.eq.f32.partialorder %v573_v33, 8.507059e+37  ;;  %vm726_vm2 = vcmask 1046528   ;;  %801 = vmatpush.bf16.msrb.mxu3 %v1805_v13  ;;  %v1819_v13 = vld [vmem:[#allocation2 + $0x128] sm:$0xff] }
 0x404   :  { %v633_v19 = vsub.f32 1.0, %v632_v18 }
 0x406   :  { %v634_v21 = vmul.f32 %v1883_v17, %v633_v19  ;;  %v1814_v19 = vld [vmem:[#allocation2 + $0x200] sm:$0xff] }
 0x407   :  { %v1885_v23 = vpop.eup %1884  ;;  %877 = vmatpush.bf16.msrb.mxu0 %v1814_v19  ;;  %v1816_v19 = vld [vmem:[#allocation2 + $0x110] sm:$0xff] }
 0x408   :  { %v635_v24 = vadd.f32 %v1883_v17, %v634_v21  ;;  %v565_v25 = vmul.f32 %v1885_v23, %v563_v16  ;;  %vm570_vm5 = vweird.f32 %v1885_v23  ;;  %v1860_v21 = vld [vmem:[%s2106_s2 + $0x6] ss:$0 sm:$0xff] }
 0x409   :  { %vm571_vm7 = vmor %vm569_vm6, %vm570_vm5 }
 0x40a   :  { %v639_v27 = vsel %vm638_vm3, %v1883_v17, %v635_v24  ;;  %v566_v28 = vsub.f32 1.0, %v565_v25 }
 0x40b   :  { %v644_v29 = vsel %vm641_vm4, %v643_v26, %v639_v27  ;;  %vm790_vm4 = vcmask 785408   ;;  %878 = vmatpush.bf16.msrb.mxu0 %v1813_v20  ;;  %v1811_v26 = vld [vmem:[#allocation2 + $0x1e8] sm:$0xff] }
 0x40c   :  { %v646_v31 = vmul.f32 %v644_v29, %v624_v1  ;;  %v567_v32 = vmul.f32 %v1885_v23, %v566_v28  ;;  %v714_v1 = vand.u32 3, %v2010_v61 }
 0x40e   :  { %v568_v34 = vadd.f32 %v1885_v23, %v567_v32  ;;  %v647_v35 = vpack.c.bf16 %v646_v31, %v646_v31  ;;  %vm2014_vm15 = vcmp.ge.s32.totalorder %v714_v1, 1  ;;  %vm728_vm3 = vcmp.lt.s32.totalorder %v714_v1, 3 }
 0x410   :  { %v572_v37 = vsel %vm571_vm7, %v1885_v23, %v568_v34  ;;  %v830_v38 = vunpack.c.l.b16 %v647_v35  ;;  %v1812_v23 = vld [vmem:[#allocation2 + $0x1f0] sm:$0xff] }
 0x411   :  { %v577_v39 = vsel %vm574_vm8, %v576_v36, %v572_v37  ;;  %879 = vmatpush.bf16.msrb.mxu0 %v1812_v23 }
 0x412   :  { %v2001_v40 = vmul.f32 %v577_v39, %v557_v7  ;;  %v831_v41 = vpack.c.b16 %v830_v38, %v830_v38 }
 0x414   :  { %v648_v42 = vpack.c.bf16 %v2001_v40, %v2001_v40  ;;  %832 = vrot.lane.b32.xlu2 %v831_v41, %s1939_s29 }
 0x415   :  { %880 = vmatpush.bf16.msrb.mxu0 %v1811_v26 }
 0x416   :  { %1605 = vmatmul.msk.bf16.vlgmr.msrb.gmra.mxu2 %vm54_vm0, %v648_v42 }
 0x499   :  { %v679_v44 = vpop.f32.mrf.mxu2 }
 0x49a   :  { %v680_v45 = vadd.f32 %v1859_v43, %v679_v44 }
 0x49c   :  { %v683_v46 = vsub.f32 0.0, %v680_v45 }
 0x49e   :  { %v684_v47 = vmul.f32 1.442695, %v683_v46 }
 0x4a0   :  { %1886 = vpow2.f32 %v684_v47  ;;  %v1861_v47 = vld [vmem:[%s2106_s2 + $0x7] ss:$0 sm:$0xff] }
 0x4a1   :  { %v681_v48 = vpop.f32.mrf.mxu2 }
 0x4a6   :  { %v1887_v50 = vpop.eup %1886 }
 0x4a7   :  { %v686_v52 = vadd.f32 1.0, %v1887_v50 }
 0x4a9   :  { %1888 = vrcp.f32 %v686_v52  ;;  %v698_v58 = vand.u32 2147483648, %v686_v52  ;;  %v696_v60 = vand.u32 2147483647, %v686_v52  ;;  %vm692_vm11 = vweird.f32 %v686_v52 }
 0x4ab   :  { %v699_v63 = vor.u32 1.1754944e-38, %v698_v58  ;;  %vm697_vm13 = vcmp.eq.f32.partialorder %v696_v60, 8.507059e+37 }
 0x4af   :  { %v1889_v54 = vpop.eup %1888 }
 0x4b0   :  { %v688_v55 = vmul.f32 %v1889_v54, %v686_v52  ;;  %vm693_vm9 = vweird.f32 %v1889_v54 }
 0x4b1   :  { %vm694_vm12 = vmor %vm692_vm11, %vm693_vm9 }
 0x4b2   :  { %v689_v57 = vsub.f32 1.0, %v688_v55 }
 0x4b4   :  { %v690_v59 = vmul.f32 %v1889_v54, %v689_v57 }
 0x4b6   :  { %v691_v62 = vadd.f32 %v1889_v54, %v690_v59 }
 0x4b8   :  { %v695_v0 = vsel %vm694_vm12, %v1889_v54, %v691_v62 }
 0x4b9   :  { %v700_v2 = vsel %vm697_vm13, %v699_v63, %v695_v0 }
 0x4ba   :  { %v702_v3 = vmul.f32 %v700_v2, %v680_v45  ;;  %v833_v45 = vpop.permute.xlu2 %832 }
 0x4bc   :  { %730 = vrot.lane.b32.xlu1 %v702_v3, %s1939_s29  ;;  %v724_v4 = vrot.slane %v702_v3, 1  ;;  %v704_v6 = vrot.slane %v702_v3, 7 }
 0x4be   :  { %v707_v7 = vsel %vm706_vm14, 0.0, %v704_v6  ;;  %v727_v9 = vsel %vm726_vm2, %v724_v4, 0.0  ;;  %vm908_vm2 = vcmask 64512   ;;  %v929_v4 = vld [vmem:[#allocation2 + $0xf8] sm:$0x3] }
 0x4bf   :  { %v723_v8 = vsel %vm2014_vm15, %v707_v7, 0.0  ;;  %v729_v10 = vsel %vm728_vm3, %v727_v9, 0.0  ;;  %vm912_vm15 = vcmask 1043456   ;;  %v946_v6 = vld [vmem:[#allocation2 + $0x100] sm:$0x3]  ;;  %v1821_v9 = vld [vmem:[#allocation2 + $0x138] sm:$0xff] }
 0x4c0   :  { %v1822_v7 = vld [vmem:[#allocation2 + $0x140] sm:$0xff] }
 0x4c4   :  { %734 = vrot.lane.b32.xlu1 %v729_v10, %s1937_s17  ;;  %v1825_v10 = vld [vmem:[#allocation2 + $0x158] sm:$0xff] }
 0x52e   :  { %v731_v14 = vpop.permute.xlu1 %730 }
 0x52f   :  { %v737_v15 = vsel %vm54_vm0, %v723_v8, %v731_v14  ;;  %v1826_v8 = vld [vmem:[#allocation2 + $0x160] sm:$0xff]  ;;  %v1823_v14 = vld [vmem:[#allocation2 + $0x148] sm:$0xff] }
 0x536   :  { %v735_v16 = vpop.permute.xlu1 %734 }
 0x537   :  { %v738_v17 = vsel %vm128_vm1, %v737_v15, %v735_v16  ;;  %v1818_v15 = vld [vmem:[#allocation2 + $0x120] sm:$0xff]  ;;  %v1817_v16 = vld [vmem:[#allocation2 + $0x118] sm:$0xff] }
 0x538   :  { %v739_v18 = vpack.c.bf16 %v738_v17, %v738_v17 }
 0x53a   :  { %1630 = vmatmul.msk.bf16.vlgmr.msrb.gmra.mxu3 %vm790_vm4, %v739_v18 }
 0x5bd   :  { %v803_v22 = vpop.f32.mrf.mxu3 }
 0x5be   :  { %v804_v24 = vadd.f32 %v1860_v21, %v803_v22 }
 0x5c0   :  { %v807_v25 = vsub.f32 0.0, %v804_v24 }
 0x5c2   :  { %v808_v27 = vmul.f32 1.442695, %v807_v25 }
 0x5c4   :  { %1890 = vpow2.f32 %v808_v27 }
 0x5c5   :  { %v805_v28 = vpop.f32.mrf.mxu3 }
 0x5ca   :  { %v1891_v29 = vpop.eup %1890 }
 0x5cb   :  { %v810_v30 = vadd.f32 1.0, %v1891_v29 }
 0x5cd   :  { %1892 = vrcp.f32 %v810_v30  ;;  %v822_v34 = vand.u32 2147483648, %v810_v30  ;;  %v820_v36 = vand.u32 2147483647, %v810_v30  ;;  %vm816_vm6 = vweird.f32 %v810_v30 }
 0x5cf   :  { %v823_v38 = vor.u32 1.1754944e-38, %v822_v34  ;;  %vm821_vm8 = vcmp.eq.f32.partialorder %v820_v36, 8.507059e+37  ;;  %v1828_v34 = vld [vmem:[#allocation2 + $0x210] sm:$0xff] }
 0x5d3   :  { %v1893_v31 = vpop.eup %1892 }
 0x5d4   :  { %v812_v32 = vmul.f32 %v1893_v31, %v810_v30  ;;  %vm817_vm5 = vweird.f32 %v1893_v31 }
 0x5d5   :  { %vm818_vm7 = vmor %vm816_vm6, %vm817_vm5 }
 0x5d6   :  { %v813_v33 = vsub.f32 1.0, %v812_v32  ;;  %v1829_v32 = vld [vmem:[#allocation2 + $0x218] sm:$0xff] }
 0x5d8   :  { %v814_v35 = vmul.f32 %v1893_v31, %v813_v33  ;;  %v1862_v33 = vld [vmem:[%s2106_s2 + $0x2] ss:$0 sm:$0xff] }
 0x5da   :  { %v815_v37 = vadd.f32 %v1893_v31, %v814_v35 }
 0x5dc   :  { %v819_v39 = vsel %vm818_vm7, %v1893_v31, %v815_v37  ;;  %v1830_v31 = vld [vmem:[#allocation2 + $0x220] sm:$0xff] }
 0x5dd   :  { %v824_v41 = vsel %vm821_vm8, %v823_v38, %v819_v39  ;;  %1159 = vmatpush.bf16.msra.mxu3 %v1830_v31  ;;  %v1827_v38 = vld [vmem:[#allocation2 + $0x208] sm:$0xff] }
 0x5de   :  { %v826_v42 = vmul.f32 %v824_v41, %v804_v24  ;;  %v1815_v24 = vld [vmem:[#allocation2 + $0x108] sm:$0xff] }
 0x5e0   :  { %v827_v43 = vadd.f32 %v826_v42, %v2001_v40 }
 0x5e1   :  { %1160 = vmatpush.bf16.msra.mxu3 %v1829_v32 }
 0x5e2   :  { %v828_v44 = vpack.c.bf16 %v827_v43, %v827_v43 }
 0x5e4   :  { %v836_v46 = vsel %vm54_vm0, %v828_v44, %v833_v45 }
 0x5e5   :  { %1647 = vmatmul.msk.bf16.vlgmr.msrb.gmra.mxu0 %vm128_vm1, %v836_v46  ;;  %1161 = vmatpush.bf16.msra.mxu3 %v1828_v34 }
 0x5e9   :  { %1162 = vmatpush.bf16.msra.mxu3 %v1827_v38 }
 0x662   :  { %v882_v48 = vpop.f32.mrf.mxu0 }
 0x663   :  { %v883_v49 = vadd.f32 %v1861_v47, %v882_v48 }
 0x665   :  { %v886_v50 = vsub.f32 0.0, %v883_v49 }
 0x667   :  { %v887_v51 = vmul.f32 1.442695, %v886_v50 }
 0x669   :  { %1894 = vpow2.f32 %v887_v51 }
 0x66a   :  { %v884_v52 = vpop.f32.mrf.mxu0 }
 0x66f   :  { %v1895_v53 = vpop.eup %1894 }
 0x670   :  { %v889_v54 = vadd.f32 1.0, %v1895_v53 }
 0x672   :  { %1896 = vrcp.f32 %v889_v54  ;;  %v901_v57 = vand.u32 2147483648, %v889_v54  ;;  %v899_v59 = vand.u32 2147483647, %v889_v54  ;;  %vm895_vm11 = vweird.f32 %v889_v54 }
 0x674   :  { %v902_v62 = vor.u32 1.1754944e-38, %v901_v57  ;;  %vm900_vm13 = vcmp.eq.f32.partialorder %v899_v59, 8.507059e+37 }
 0x678   :  { %v1897_v40 = vpop.eup %1896 }
 0x679   :  { %v891_v55 = vmul.f32 %v1897_v40, %v889_v54  ;;  %vm896_vm9 = vweird.f32 %v1897_v40 }
 0x67a   :  { %vm897_vm12 = vmor %vm895_vm11, %vm896_vm9 }
 0x67b   :  { %v892_v56 = vsub.f32 1.0, %v891_v55 }
 0x67d   :  { %v893_v58 = vmul.f32 %v1897_v40, %v892_v56  ;;  %v1863_v56 = vld [vmem:[%s2106_s2 + $0x8] ss:$0 sm:$0xff] }
 0x67f   :  { %v894_v60 = vadd.f32 %v1897_v40, %v893_v58 }
 0x681   :  { %v898_v63 = vsel %vm897_vm12, %v1897_v40, %v894_v60 }
 0x682   :  { %v903_v0 = vsel %vm900_vm13, %v902_v62, %v898_v63  ;;  %vm1208_vm13 = vcmask 1042432  }
 0x683   :  { %v905_v1 = vmul.f32 %v903_v0, %v883_v49 }
 0x685   :  { %v906_v2 = vpack.c.bf16 %v905_v1, %v905_v1 }
 0x687   :  { %v914_v3 = vsel %vm912_vm15, %v906_v2, 0 }
 0x688   :  { %923 = vmatpush.bf16.msrb.mxu1 %v914_v3  ;;  %940 = vmatpush.bf16.msra.mxu2 %v914_v3 }
 0x689   :  { %957 = vmatpush.bf16.msra.mxu0 %v914_v3 }
 0x68b   :  { %1649 = vmatmul.msk.bf16.vlgmr.msra.gmra.mxu2 %vm908_vm2, %v929_v4  ;;  %1648 = vmatmul.msk.bf16.vlgmr.msrb.gmra.mxu1 %vm908_vm2, %v907_v5 }
 0x68c   :  { %1650 = vmatmul.msk.bf16.vlgmr.msra.gmra.mxu0 %vm908_vm2, %v946_v6  ;;  %1071 = vmatpush.bf16.msra.mxu1 %v1822_v7 }
 0x68d   :  { %1088 = vmatpush.bf16.msrb.mxu2 %v1826_v8 }
 0x690   :  { %1072 = vmatpush.bf16.msra.mxu1 %v1821_v9  ;;  %v1196_v9 = vand.u32 1, %v2010_v61 }
 0x691   :  { %1089 = vmatpush.bf16.msrb.mxu2 %v1825_v10 }
 0x692   :  { %vm2048_vm15 = vcmp.ge.s32.totalorder %v1196_v9, 1  ;;  %vm2053_vm2 = vcmp.lt.s32.totalorder %v1196_v9, 1  ;;  %v1841_v9 = vld [vmem:[#allocation2 + $0x278] sm:$0xff] }
 0x694   :  { %1073 = vmatpush.bf16.msra.mxu1 %v1820_v11 }
 0x695   :  { %1090 = vmatpush.bf16.msrb.mxu2 %v1824_v12 }
 0x698   :  { %1074 = vmatpush.bf16.msra.mxu1 %v1819_v13 }
 0x699   :  { %1091 = vmatpush.bf16.msrb.mxu2 %v1823_v14 }
 0x69c   :  { %1075 = vmatpush.bf16.msra.mxu1 %v1818_v15 }
 0x6a0   :  { %1076 = vmatpush.bf16.msra.mxu1 %v1817_v16 }
 0x6a4   :  { %1077 = vmatpush.bf16.msra.mxu1 %v1816_v19 }
 0x6a8   :  { %1078 = vmatpush.bf16.msra.mxu1 %v1815_v24 }
 0x708   :  { %v925_v23 = vpop.f32.mrf.mxu1 }
 0x709   :  { %v959_v17 = vpop.f32.mrf.mxu0 }
 0x70a   :  { %v969_v18 = vpack.c.bf16 %v959_v17, %v959_v17 }
 0x70c   :  { %1699 = vmatmul.msk.bf16.vlgmr.msrb.gmra.mxu2 %vm128_vm1, %v969_v18 }
 0x70e   :  { %v942_v20 = vpop.f32.mrf.mxu2 }
 0x70f   :  { %964 = vrot.lane.b32.xlu2 %v942_v20, %s1937_s17 }
 0x710   :  { %v927_v25 = vpop.f32.mrf.mxu1 }
 0x711   :  { %v961_v21 = vpop.f32.mrf.mxu0 }
 0x716   :  { %v944_v22 = vpop.f32.mrf.mxu2 }
 0x769   :  { %v965_v26 = vpop.permute.xlu2 %964 }
 0x76a   :  { %v967_v27 = vsel %vm128_vm1, %v925_v23, %v965_v26 }
 0x76b   :  { %v968_v28 = vpack.c.bf16 %v967_v27, %v967_v27 }
 0x76d   :  { %1079 = vmatmul.bf16.vlgmr.msra.gmra.mxu1 %v968_v28 }
 0x78f   :  { %v1093_v29 = vpop.f32.mrf.mxu2 }
 0x797   :  { %v1095_v30 = vpop.f32.mrf.mxu2 }
 0x7ea   :  { %v1080_v35 = vpop.f32.mrf.mxu1 }
 0x7eb   :  { %v1081_v36 = vadd.f32 %v1862_v33, %v1080_v35 }
 0x7ed   :  { %v1094_v37 = vadd.f32 %v1093_v29, %v1081_v36 }
 0x7ef   :  { %v1097_v39 = vsub.f32 0.0, %v1094_v37 }
 0x7f1   :  { %v1098_v41 = vmul.f32 1.442695, %v1097_v39 }
 0x7f2   :  { %v1082_v42 = vpop.f32.mrf.mxu1 }
 0x7f3   :  { %1898 = vpow2.f32 %v1098_v41 }
 0x7f9   :  { %v1899_v43 = vpop.eup %1898 }
 0x7fa   :  { %v1100_v44 = vadd.f32 1.0, %v1899_v43 }
 0x7fc   :  { %1900 = vrcp.f32 %v1100_v44  ;;  %v1112_v48 = vand.u32 2147483648, %v1100_v44  ;;  %v1110_v50 = vand.u32 2147483647, %v1100_v44  ;;  %vm1106_vm5 = vweird.f32 %v1100_v44 }
 0x7fe   :  { %v1113_v52 = vor.u32 1.1754944e-38, %v1112_v48  ;;  %vm1111_vm7 = vcmp.eq.f32.partialorder %v1110_v50, 8.507059e+37 }
 0x802   :  { %v1901_v45 = vpop.eup %1900 }
 0x803   :  { %v1102_v46 = vmul.f32 %v1901_v45, %v1100_v44  ;;  %vm1107_vm3 = vweird.f32 %v1901_v45 }
 0x804   :  { %vm1108_vm6 = vmor %vm1106_vm5, %vm1107_vm3 }
 0x805   :  { %v1103_v47 = vsub.f32 1.0, %v1102_v46 }
 0x807   :  { %v1104_v49 = vmul.f32 %v1901_v45, %v1103_v47 }
 0x809   :  { %v1105_v51 = vadd.f32 %v1901_v45, %v1104_v49 }
 0x80b   :  { %v1109_v53 = vsel %vm1108_vm6, %v1901_v45, %v1105_v51  ;;  %v1838_v51 = vld [vmem:[#allocation2 + $0x260] sm:$0xff] }
 0x80c   :  { %v1114_v54 = vsel %vm1111_vm7, %v1113_v52, %v1109_v53  ;;  %1349 = vmatpush.bf16.msrb.mxu0 %v1838_v51  ;;  %v1837_v52 = vld [vmem:[#allocation2 + $0x258] sm:$0xff]  ;;  %v1836_v53 = vld [vmem:[#allocation2 + $0x250] sm:$0xff] }
 0x80d   :  { %v1116_v40 = vmul.f32 %v1114_v54, %v1094_v37  ;;  %v1835_v54 = vld [vmem:[#allocation2 + $0x248] sm:$0xff] }
 0x80f   :  { %v1117_v55 = vpack.c.bf16 %v1116_v40, %v1116_v40  ;;  %v1834_v40 = vld [vmem:[#allocation2 + $0x240] sm:$0xff] }
 0x810   :  { %1350 = vmatpush.bf16.msrb.mxu0 %v1837_v52 }
 0x811   :  { %1716 = vmatmul.msk.bf16.vlgmr.msra.gmra.mxu3 %vm128_vm1, %v1117_v55  ;;  %v1833_v55 = vld [vmem:[#allocation2 + $0x238] sm:$0xff] }
 0x814   :  { %1351 = vmatpush.bf16.msrb.mxu0 %v1836_v53 }
 0x818   :  { %1352 = vmatpush.bf16.msrb.mxu0 %v1835_v54 }
 0x81c   :  { %1353 = vmatpush.bf16.msrb.mxu0 %v1834_v40 }
 0x820   :  { %1354 = vmatpush.bf16.msrb.mxu0 %v1833_v55 }
 0x894   :  { %v1164_v57 = vpop.f32.mrf.mxu3 }
 0x895   :  { %v1165_v58 = vadd.f32 %v1863_v56, %v1164_v57  ;;  %v1832_v57 = vld [vmem:[#allocation2 + $0x230] sm:$0xff] }
 0x896   :  { %1355 = vmatpush.bf16.msrb.mxu0 %v1832_v57 }
 0x897   :  { %v1168_v59 = vsub.f32 0.0, %v1165_v58 }
 0x899   :  { %v1169_v60 = vmul.f32 1.442695, %v1168_v59 }
 0x89b   :  { %1902 = vpow2.f32 %v1169_v60 }
 0x89c   :  { %v1166_v62 = vpop.f32.mrf.mxu3 }
 0x8a1   :  { %v1903_v63 = vpop.eup %1902 }
 0x8a2   :  { %v1171_v0 = vadd.f32 1.0, %v1903_v63 }
 0x8a4   :  { %1904 = vrcp.f32 %v1171_v0  ;;  %v1183_v4 = vand.u32 2147483648, %v1171_v0  ;;  %v1181_v6 = vand.u32 2147483647, %v1171_v0  ;;  %vm1177_vm9 = vweird.f32 %v1171_v0 }
 0x8a6   :  { %v1184_v8 = vor.u32 1.1754944e-38, %v1183_v4  ;;  %vm1182_vm12 = vcmp.eq.f32.partialorder %v1181_v6, 8.507059e+37 }
 0x8aa   :  { %v1905_v1 = vpop.eup %1904 }
 0x8ab   :  { %v1173_v2 = vmul.f32 %v1905_v1, %v1171_v0  ;;  %vm1178_vm8 = vweird.f32 %v1905_v1  ;;  %v1831_v0 = vld [vmem:[#allocation2 + $0x228] sm:$0xff] }
 0x8ac   :  { %vm1179_vm11 = vmor %vm1177_vm9, %vm1178_vm8  ;;  %1356 = vmatpush.bf16.msrb.mxu0 %v1831_v0 }
 0x8ad   :  { %v1174_v3 = vsub.f32 1.0, %v1173_v2 }
 0x8af   :  { %v1175_v5 = vmul.f32 %v1905_v1, %v1174_v3 }
 0x8b1   :  { %v1176_v7 = vadd.f32 %v1905_v1, %v1175_v5 }
 0x8b3   :  { %v1180_v10 = vsel %vm1179_vm11, %v1905_v1, %v1176_v7 }
 0x8b4   :  { %v1185_v11 = vsel %vm1182_vm12, %v1184_v8, %v1180_v10  ;;  %v1842_v8 = vld [vmem:[#allocation2 + $0x280] sm:$0xff]  ;;  %v1864_v10 = vld [vmem:[%s2106_s2 + $0x9] ss:$0 sm:$0xff] }
 0x8b5   :  { %v2045_v12 = vmul.f32 %v1185_v11, %v1165_v58  ;;  %1424 = vmatpush.bf16.msra.mxu2 %v1842_v8  ;;  %v1840_v11 = vld [vmem:[#allocation2 + $0x270] sm:$0xff] }
 0x8b7   :  { %v1189_v13 = vrot.slane %v2045_v12, 7  ;;  %v1206_v15 = vrot.slane %v2045_v12, 1 }
 0x8b9   :  { %v1191_v61 = vsel %vm706_vm14, -inf, %v1189_v13  ;;  %v1209_v17 = vsel %vm1208_vm13, %v1206_v15, -inf  ;;  %1425 = vmatpush.bf16.msra.mxu2 %v1841_v9 }
 0x8ba   :  { %v1205_v18 = vsel %vm2048_vm15, %v1191_v61, -inf  ;;  %v1211_v19 = vsel %vm2053_vm2, %v1209_v17, -inf }
 0x8bb   :  { %v1212_v20 = vmax.f32 %v1205_v18, %v1211_v19 }
 0x8bd   :  { %v1213_v21 = vmax.f32 %v2045_v12, %v1212_v20  ;;  %1426 = vmatpush.bf16.msra.mxu2 %v1840_v11 }
 0x8bf   :  { %1219 = vrot.lane.b32.xlu1 %v1213_v21, %s1940_s13  ;;  %1215 = vrot.lane.b32.xlu0 %v1213_v21, %s1941_s14 }
 0x931   :  { %v1220_v22 = vpop.permute.xlu1 %1219  ;;  %v1216_v23 = vpop.permute.xlu0 %1215 }
 0x932   :  { %v1222_v24 = vsel %vm304_vm10, %v1220_v22, -inf  ;;  %v1218_v25 = vsel %vm304_vm10, -inf, %v1216_v23 }
 0x933   :  { %v1223_v26 = vmax.f32 %v1218_v25, %v1222_v24 }
 0x935   :  { %v1224_v27 = vmax.f32 %v1213_v21, %v1223_v26 }
 0x937   :  { %v1226_v28 = vrot.slane %v1224_v27, 7  ;;  %v1230_v29 = vrot.slane %v1224_v27, 1 }
 0x939   :  { %v1228_v30 = vsel %vm706_vm14, -inf, %v1226_v28  ;;  %v1232_v31 = vsel %vm1208_vm13, %v1230_v29, -inf }
 0x93a   :  { %v1229_v32 = vsel %vm2048_vm15, %v1228_v30, -inf  ;;  %v1233_v33 = vsel %vm2053_vm2, %v1232_v31, -inf  ;;  %v1865_v31 = vld [vmem:[%s2106_s2 + $0xa] ss:$0 sm:$0xff] }
 0x93b   :  { %v1234_v34 = vmax.f32 %v1229_v32, %v1233_v33 }
 0x93d   :  { %v1235_v35 = vmax.f32 %v1224_v27, %v1234_v34 }
 0x93f   :  { %1241 = vrot.lane.b32.xlu0 %v1235_v35, %s1940_s13  ;;  %1237 = vrot.lane.b32.xlu2 %v1235_v35, %s1941_s14 }
 0x947   :  { %1269 = vrot.lane.b32.xlu0 %v1224_v27, %s1939_s29 }
 0x999   :  { %v1238_v36 = vpop.permute.xlu2 %1237 }
 0x99a   :  { %v1240_v38 = vsel %vm304_vm10, -inf, %v1238_v36 }
 0x9b1   :  { %v1242_v37 = vpop.permute.xlu0 %1241 }
 0x9b2   :  { %v1244_v39 = vsel %vm304_vm10, %v1242_v37, -inf }
 0x9b3   :  { %v1245_v41 = vmax.f32 %v1240_v38, %v1244_v39 }
 0x9b5   :  { %v1246_v42 = vmax.f32 %v1235_v35, %v1245_v41 }
 0x9b7   :  { %v1248_v43 = vrot.slane %v1246_v42, 7  ;;  %v1252_v44 = vrot.slane %v1246_v42, 1 }
 0x9b9   :  { %v1250_v45 = vsel %vm706_vm14, -inf, %v1248_v43  ;;  %v1254_v46 = vsel %vm1208_vm13, %v1252_v44, -inf  ;;  %v1270_v1 = vpop.permute.xlu0 %1269 }
 0x9ba   :  { %v1251_v47 = vsel %vm2048_vm15, %v1250_v45, -inf  ;;  %v1255_v48 = vsel %vm2053_vm2, %v1254_v46, -inf  ;;  %v1279_v3 = vsel %vm54_vm0, %v2045_v12, %v1270_v1  ;;  %v1839_v12 = vld [vmem:[#allocation2 + $0x268] sm:$0xff] }
 0x9bb   :  { %v1256_v49 = vmax.f32 %v1251_v47, %v1255_v48  ;;  %1427 = vmatpush.bf16.msra.mxu2 %v1839_v12 }
 0x9bd   :  { %v1257_v50 = vmax.f32 %v1246_v42, %v1256_v49 }
 0x9bf   :  { %1263 = vrot.lane.b32.xlu2 %v1257_v50, %s1940_s13  ;;  %1259 = vrot.lane.b32.xlu1 %v1257_v50, %s1941_s14 }
 0x9c7   :  { %1272 = vrot.lane.b32.xlu1 %v1246_v42, %s1937_s17 }
 0xa19   :  { %v1264_v56 = vpop.permute.xlu2 %1263 }
 0xa1a   :  { %v1266_v59 = vsel %vm304_vm10, %v1264_v56, -inf }
 0xa31   :  { %v1260_v58 = vpop.permute.xlu1 %1259 }
 0xa32   :  { %v1262_v60 = vsel %vm304_vm10, -inf, %v1260_v58 }
 0xa33   :  { %v1267_v62 = vmax.f32 %v1262_v60, %v1266_v59 }
 0xa35   :  { %v1268_v63 = vmax.f32 %v1257_v50, %v1267_v62 }
 0xa37   :  { %1276 = vrot.lane.b32.xlu2 %v1268_v63, %s1942_s15 }
 0xa39   :  { %v1273_v2 = vpop.permute.xlu1 %1272 }
 0xa3a   :  { %v1280_v4 = vsel %vm128_vm1, %v1279_v3, %v1273_v2 }
 0xa91   :  { %v1277_v5 = vpop.permute.xlu2 %1276 }
 0xa92   :  { %v1281_v6 = vsel %vm790_vm4, %v1280_v4, %v1277_v5 }
 0xa93   :  { %v1282_v7 = vpack.c.bf16 %v1281_v6, %v1281_v6 }
 0xa95   :  { %1357 = vmatmul.bf16.vlgmr.msrb.gmra.mxu0 %v1282_v7 }
 0xb12   :  { %v1358_v13 = vpop.f32.mrf.mxu0 }
 0xb13   :  { %v1359_v14 = vadd.f32 %v1864_v10, %v1358_v13 }
 0xb15   :  { %v1362_v15 = vsub.f32 0.0, %v1359_v14 }
 0xb17   :  { %v1363_v16 = vmul.f32 1.442695, %v1362_v15 }
 0xb19   :  { %1906 = vpow2.f32 %v1363_v16 }
 0xb1a   :  { %v1360_v61 = vpop.f32.mrf.mxu0 }
 0xb1f   :  { %v1907_v17 = vpop.eup %1906 }
 0xb20   :  { %v1365_v18 = vadd.f32 1.0, %v1907_v17 }
 0xb22   :  { %1908 = vrcp.f32 %v1365_v18  ;;  %v1377_v22 = vand.u32 2147483648, %v1365_v18  ;;  %v1375_v24 = vand.u32 2147483647, %v1365_v18  ;;  %vm1371_vm10 = vweird.f32 %v1365_v18 }
 0xb24   :  { %v1378_v26 = vor.u32 1.1754944e-38, %v1377_v22  ;;  %vm1376_vm4 = vcmp.eq.f32.partialorder %v1375_v24, 8.507059e+37 }
 0xb28   :  { %v1909_v19 = vpop.eup %1908 }
 0xb29   :  { %v1367_v20 = vmul.f32 %v1909_v19, %v1365_v18  ;;  %vm1372_vm0 = vweird.f32 %v1909_v19 }
 0xb2a   :  { %vm1373_vm14 = vmor %vm1371_vm10, %vm1372_vm0 }
 0xb2b   :  { %v1368_v21 = vsub.f32 1.0, %v1367_v20 }
 0xb2d   :  { %v1369_v23 = vmul.f32 %v1909_v19, %v1368_v21 }
 0xb2f   :  { %v1370_v25 = vadd.f32 %v1909_v19, %v1369_v23 }
 0xb31   :  { %v1374_v27 = vsel %vm1373_vm14, %v1909_v19, %v1370_v25 }
 0xb32   :  { %v1379_v28 = vsel %vm1376_vm4, %v1378_v26, %v1374_v27 }
 0xb33   :  { %v1381_v29 = vmul.f32 %v1379_v28, %v1359_v14 }
 0xb35   :  { %v1382_v30 = vpack.c.bf16 %v1381_v29, %v1381_v29 }
 0xb37   :  { %1765 = vmatmul.msk.bf16.vlgmr.msra.gmra.mxu2 %vm128_vm1, %v1382_v30 }
 0xbba   :  { %v1429_v32 = vpop.f32.mrf.mxu2 }
 0xbbb   :  { %v1430_v33 = vadd.f32 %v1865_v31, %v1429_v32 }
 0xbbd   :  { %1433 = vst [vmem:[%s2107_s3] sm:$0xf] %v1430_v33 }
 0xbc2   :  { %v1431_v34 = vpop.f32.mrf.mxu2 }
 0xbc3   :  { %1438 = vsyncpa [#allocation3], 1 }

</bundles_post_ra>
